<compile_context>
chip_gen: v7x
topology: tpu7x:2x2x1
jax: 0.10.0
libtpu: 0.0.40
codegen_flags: <defaults>
</compile_context>

<pallas_src>
import jax
import jax.numpy as jnp
from jax.experimental import pallas as pl
from jax.experimental.pallas import tpu as pltpu

LANE = 128                      # TPU lane width; pad feature dims to this
TILE_M = 256                    # node (output-row) tile of A
TILE_K = 512                    # neighbor (reduction) tile of A
SMALL_N = 2048                  # padded-N threshold for the resident-A path
VMEM_LIMIT = 48 * 1024 * 1024   # safe on v7x (64 MiB physical VMEM)


def _round_up(n, m):
    return ((n + m - 1) // m) * m


def _pad2d(a, rows, cols):
    return jnp.pad(a, ((0, rows - a.shape[0]), (0, cols - a.shape[1])))


# ------------------- kernel 1: A @ XW1 -> relu(+b1) @ W2 ---------------------
def gcn1_kernel(a_ref, xw1_ref, b1_ref, w2_ref, o_ref, acc_ref):
    k = pl.program_id(1)

    @pl.when(k == 0)
    def _init():
        acc_ref[...] = jnp.zeros_like(acc_ref)

    # Pure aggregation: the feature transform was hoisted out of this loop.
    acc_ref[...] += jnp.dot(a_ref[...], xw1_ref[...],
                            preferred_element_type=jnp.float32)

    @pl.when(k == pl.num_programs(1) - 1)
    def _finalize():
        h = jnp.maximum(acc_ref[...] + b1_ref[...], 0.0).astype(jnp.bfloat16)
        # Fuse the layer-2 feature transform here so kernel 2 is aggregation-only.
        o_ref[...] = jnp.dot(h, w2_ref[...],
                             preferred_element_type=jnp.float32).astype(o_ref.dtype)


# ------------- kernel 2: A @ (H1 W2)  + b2, then the MLP epilogue ------------
def gcn2_mlp_kernel(a_ref, hw2_ref, b2_ref, w3_ref, b3_ref, w4_ref, b4_ref,
                    o_ref, acc_ref):
    k = pl.program_id(1)

    @pl.when(k == 0)
    def _init():
        acc_ref[...] = jnp.zeros_like(acc_ref)

    acc_ref[...] += jnp.dot(a_ref[...], hw2_ref[...],
                            preferred_element_type=jnp.float32)

    @pl.when(k == pl.num_programs(1) - 1)
    def _finalize():
        g = (acc_ref[...] + b2_ref[...]).astype(jnp.bfloat16)   # no ReLU in spec
        m = jnp.maximum(
            jnp.dot(g, w3_ref[...], preferred_element_type=jnp.float32)
            + b3_ref[...], 0.0).astype(jnp.bfloat16)
        o_ref[...] = (jnp.dot(m, w4_ref[...], preferred_element_type=jnp.float32)
                      + b4_ref[...])


# -------- small-graph fast path: A resident, both layers + MLP fused ---------
def fused_small_kernel(a_ref, xw1_ref, b1_ref, w2_ref, b2_ref, w3_ref, b3_ref,
                       w4_ref, b4_ref, o_ref):
    a = a_ref[...]
    h1 = jnp.maximum(
        jnp.dot(a, xw1_ref[...], preferred_element_type=jnp.float32)
        + b1_ref[...], 0.0).astype(jnp.bfloat16)
    h1w2 = jnp.dot(h1, w2_ref[...],
                   preferred_element_type=jnp.float32).astype(jnp.bfloat16)
    g = (jnp.dot(a, h1w2, preferred_element_type=jnp.float32)
         + b2_ref[...]).astype(jnp.bfloat16)
    m = jnp.maximum(
        jnp.dot(g, w3_ref[...], preferred_element_type=jnp.float32)
        + b3_ref[...], 0.0).astype(jnp.bfloat16)
    o_ref[...] = (jnp.dot(m, w4_ref[...], preferred_element_type=jnp.float32)
                  + b4_ref[...])


# --------------------------------- wrapper -----------------------------------
def _normalized_adjacency(edge_index, n):
    """Dense A_norm[dst, src] matching PyG gcn_norm (add_remaining_self_loops)."""
    src, dst = edge_index[0], edge_index[1]
    adj = jnp.zeros((n, n), jnp.float32).at[dst, src].add(1.0)
    diag = jnp.diagonal(adj)
    adj = adj + jnp.diag(jnp.where(diag > 0.0, 0.0, 1.0))
    deg = jnp.sum(adj, axis=1)
    dinv = jnp.where(deg > 0.0, jax.lax.rsqrt(deg), 0.0)
    return dinv[:, None] * adj * dinv[None, :]


def gcn_with_mlp_forward(x, edge_index, params, *, tm=TILE_M, tk=TILE_K,
                         force_tiled=False):
    """x: (N, C_in) f32, edge_index: (2, E) int32 (row 0 = src, row 1 = dst)."""
    n, c_in = x.shape
    w1, b1, w2, b2, w3, b3, w4, b4 = params
    hidden, gcn_out = w1.shape[1], w2.shape[1]
    mlp_hidden, out_classes = w3.shape[1], w4.shape[1]

    # ---- JAX glue: dense normalized adjacency + tiny XW1 precompute --------
    # TODO(synk): for large sparse graphs replace this dense A @ H with a CSR
    # SpMM driven by PrefetchScalarGridSpec row/col-index prefetch (O(E*F)).
    a_norm = _normalized_adjacency(edge_index, n)
    xw1 = x @ w1                       # (N, hidden): tiny, done once in f32

    # ----------------------- pad to TPU-friendly shapes ---------------------
    hid_p = _round_up(hidden, LANE)
    gcn_p = _round_up(gcn_out, LANE)
    mlp_p = _round_up(mlp_hidden, LANE)
    out_p = _round_up(out_classes, LANE)

    b1_p = _pad2d(b1, 1, hid_p)                            # biases stay f32
    b2_p = _pad2d(b2, 1, gcn_p)
    b3_p = _pad2d(b3, 1, mlp_p)
    b4_p = _pad2d(b4, 1, out_p)
    w2_p = _pad2d(w2, hid_p, gcn_p).astype(jnp.bfloat16)   # bf16 MXU operands
    w3_p = _pad2d(w3, gcn_p, mlp_p).astype(jnp.bfloat16)
    w4_p = _pad2d(w4, mlp_p, out_p).astype(jnp.bfloat16)

    n_small = _round_up(n, LANE)
    use_small = (not force_tiled) and (n_small <= SMALL_N)

    if use_small:
        # ---------------- resident-A single-pass fused kernel ---------------
        n_p = n_small
        a_p = _pad2d(a_norm, n_p, n_p).astype(jnp.bfloat16)
        xw1_p = _pad2d(xw1, n_p, hid_p).astype(jnp.bfloat16)

        flops = (2 * n_p * n_p * (hid_p + gcn_p)
                 + 2 * n_p * (hid_p * gcn_p + gcn_p * mlp_p + mlp_p * out_p))
        bytes_accessed = (n_p * n_p * 2 + n_p * hid_p * 2 + n_p * out_p * 4
                          + hid_p * gcn_p * 2 + gcn_p * mlp_p * 2
                          + mlp_p * out_p * 2)

        out_padded = pl.pallas_call(
            fused_small_kernel,
            out_shape=jax.ShapeDtypeStruct((n_p, out_p), jnp.float32),
            grid_spec=pltpu.PrefetchScalarGridSpec(
                num_scalar_prefetch=0, grid=(1,),
                in_specs=[
                    pl.BlockSpec((n_p, n_p), lambda i: (0, 0)),      # A (resident)
                    pl.BlockSpec((n_p, hid_p), lambda i: (0, 0)),    # XW1
                    pl.BlockSpec((1, hid_p), lambda i: (0, 0)),      # b1
                    pl.BlockSpec((hid_p, gcn_p), lambda i: (0, 0)),  # W2
                    pl.BlockSpec((1, gcn_p), lambda i: (0, 0)),      # b2
                    pl.BlockSpec((gcn_p, mlp_p), lambda i: (0, 0)),  # W3
                    pl.BlockSpec((1, mlp_p), lambda i: (0, 0)),      # b3
                    pl.BlockSpec((mlp_p, out_p), lambda i: (0, 0)),  # W4
                    pl.BlockSpec((1, out_p), lambda i: (0, 0)),      # b4
                ],
                out_specs=pl.BlockSpec((n_p, out_p), lambda i: (0, 0))),
            compiler_params=pltpu.CompilerParams(
                dimension_semantics=("arbitrary",),
                vmem_limit_bytes=VMEM_LIMIT),
            cost_estimate=pl.CostEstimate(flops=flops, transcendentals=0,
                                          bytes_accessed=bytes_accessed),
        )(a_p, xw1_p, b1_p, w2_p, b2_p, w3_p, b3_p, w4_p, b4_p)
        return out_padded[:n, :out_classes]

    # ------------------- large-graph two-pass tiled kernels -----------------
    assert tm % LANE == 0 and tk % LANE == 0
    n_p = _round_up(n, max(tm, tk))
    assert n_p % tm == 0 and n_p % tk == 0

    a_p = _pad2d(a_norm, n_p, n_p).astype(jnp.bfloat16)
    xw1_p = _pad2d(xw1, n_p, hid_p).astype(jnp.bfloat16)

    grid = (n_p // tm, n_p // tk)
    cparams = pltpu.CompilerParams(
        dimension_semantics=("parallel", "arbitrary"),
        vmem_limit_bytes=VMEM_LIMIT)

    # ------------------------------ GCN layer 1 -----------------------------
    flops1 = 2 * n_p * n_p * hid_p + 2 * n_p * hid_p * gcn_p
    bytes1 = (n_p * n_p * 2 + (n_p // tm) * n_p * hid_p * 2
              + n_p * gcn_p * 2 + hid_p * gcn_p * 2)
    h1w2 = pl.pallas_call(
        gcn1_kernel,
        out_shape=jax.ShapeDtypeStruct((n_p, gcn_p), jnp.bfloat16),
        grid_spec=pltpu.PrefetchScalarGridSpec(
            num_scalar_prefetch=0, grid=grid,
            in_specs=[
                pl.BlockSpec((tm, tk), lambda i, k: (i, k)),         # A tile
                pl.BlockSpec((tk, hid_p), lambda i, k: (k, 0)),      # XW1 k-tile
                pl.BlockSpec((1, hid_p), lambda i, k: (0, 0)),       # b1
                pl.BlockSpec((hid_p, gcn_p), lambda i, k: (0, 0)),   # W2
            ],
            out_specs=pl.BlockSpec((tm, gcn_p), lambda i, k: (i, 0)),
            scratch_shapes=[pltpu.VMEM((tm, hid_p), jnp.float32)]),
        compiler_params=cparams,
        cost_estimate=pl.CostEstimate(flops=flops1, transcendentals=0,
                                      bytes_accessed=bytes1),
    )(a_p, xw1_p, b1_p, w2_p)

    # ---------------------- GCN layer 2 + MLP epilogue ----------------------
    flops2 = (2 * n_p * n_p * gcn_p + 2 * n_p * gcn_p * mlp_p
              + 2 * n_p * mlp_p * out_p)
    bytes2 = (n_p * n_p * 2 + (n_p // tm) * n_p * gcn_p * 2
              + n_p * out_p * 4 + gcn_p * mlp_p * 2 + mlp_p * out_p * 2)
    out_padded = pl.pallas_call(
        gcn2_mlp_kernel,
        out_shape=jax.ShapeDtypeStruct((n_p, out_p), jnp.float32),
        grid_spec=pltpu.PrefetchScalarGridSpec(
            num_scalar_prefetch=0, grid=grid,
            in_specs=[
                pl.BlockSpec((tm, tk), lambda i, k: (i, k)),         # A tile
                pl.BlockSpec((tk, gcn_p), lambda i, k: (k, 0)),      # (H1 W2) k-tile
                pl.BlockSpec((1, gcn_p), lambda i, k: (0, 0)),       # b2
                pl.BlockSpec((gcn_p, mlp_p), lambda i, k: (0, 0)),   # W3
                pl.BlockSpec((1, mlp_p), lambda i, k: (0, 0)),       # b3
                pl.BlockSpec((mlp_p, out_p), lambda i, k: (0, 0)),   # W4
                pl.BlockSpec((1, out_p), lambda i, k: (0, 0)),       # b4
            ],
            out_specs=pl.BlockSpec((tm, out_p), lambda i, k: (i, 0)),
            scratch_shapes=[pltpu.VMEM((tm, gcn_p), jnp.float32)]),
        compiler_params=cparams,
        cost_estimate=pl.CostEstimate(flops=flops2, transcendentals=0,
                                      bytes_accessed=bytes2),
    )(a_p, h1w2, b2_p, w3_p, b3_p, w4_p, b4_p)

    return out_padded[:n, :out_classes]


# --------------------------------- params ------------------------------------
def init_params(key, in_channels, hidden_channels, gcn_out_channels,
                mlp_hidden, out_classes):
    ks = jax.random.split(key, 4)

    def glorot(k, shape):
        lim = jnp.sqrt(6.0 / (shape[0] + shape[1]))
        return jax.random.uniform(k, shape, jnp.float32, -lim, lim)

    w1 = glorot(ks[0], (in_channels, hidden_channels))
    b1 = jnp.zeros((1, hidden_channels), jnp.float32)
    w2 = glorot(ks[1], (hidden_channels, gcn_out_channels))
    b2 = jnp.zeros((1, gcn_out_channels), jnp.float32)
    w3 = glorot(ks[2], (gcn_out_channels, mlp_hidden))
    b3 = jnp.zeros((1, mlp_hidden), jnp.float32)
    w4 = glorot(ks[3], (mlp_hidden, out_classes))
    b4 = jnp.zeros((1, out_classes), jnp.float32)
    return (w1, b1, w2, b2, w3, b3, w4, b4)


def reference_forward(x, edge_index, params):
    """Pure-JAX f32 reference with identical gcn_norm semantics."""
    a = _normalized_adjacency(edge_index, x.shape[0])
    w1, b1, w2, b2, w3, b3, w4, b4 = params
    h = jnp.maximum(a @ (x @ w1) + b1, 0.0)
    h = a @ (h @ w2) + b2
    h = jnp.maximum(h @ w3 + b3, 0.0)
    return h @ w4 + b4


if __name__ == "__main__":
    # Small synthetic graph (N not a multiple of 128 on purpose -> exercises
    # padding; the forced-tiled run exercises a 2x1 grid with tm=256/tk=512).
    N, E = 200, 600
    in_channels, hidden_channels, gcn_out_channels = 4, 8, 8
    mlp_hidden, out_classes = 64, 2

    key = jax.random.PRNGKey(0)
    k_x, k_e, k_p = jax.random.split(key, 3)

    x = jax.random.normal(k_x, (N, in_channels), jnp.float32)
    edge_index = jax.random.randint(k_e, (2, E), 0, N, dtype=jnp.int32)

    params = init_params(k_p, in_channels, hidden_channels,
                         gcn_out_channels, mlp_hidden, out_classes)

    ref = reference_forward(x, edge_index, params)

    # 1) small-graph fast path (A resident, single fused kernel)
    out_fast = jax.block_until_ready(gcn_with_mlp_forward(x, edge_index, params))
    assert out_fast.shape == (N, out_classes)
    err_fast = float(jnp.max(jnp.abs(out_fast - ref)))
    assert jnp.allclose(out_fast, ref, atol=1e-1, rtol=1e-1), err_fast

    # 2) large-graph tiled path (forced, to exercise the grid kernels)
    out_tiled = jax.block_until_ready(
        gcn_with_mlp_forward(x, edge_index, params, force_tiled=True))
    assert out_tiled.shape == (N, out_classes)
    err_tiled = float(jnp.max(jnp.abs(out_tiled - ref)))
    assert jnp.allclose(out_tiled, ref, atol=1e-1, rtol=1e-1), err_tiled

    print("KERNEL_OK")
</pallas_src>

<mosaic_0001>
module attributes {stable_mosaic.version = 11 : i64} {
  func.func @fused_small_kernel(%arg0: i32, %arg1: memref<256x256xbf16, #tpu.memory_space<vmem>>, %arg2: memref<256x128xbf16, #tpu.memory_space<vmem>>, %arg3: memref<1x128xf32, #tpu.memory_space<vmem>>, %arg4: memref<128x128xbf16, #tpu.memory_space<vmem>>, %arg5: memref<1x128xf32, #tpu.memory_space<vmem>>, %arg6: memref<128x128xbf16, #tpu.memory_space<vmem>>, %arg7: memref<1x128xf32, #tpu.memory_space<vmem>>, %arg8: memref<128x128xbf16, #tpu.memory_space<vmem>>, %arg9: memref<1x128xf32, #tpu.memory_space<vmem>>, %arg10: memref<256x128xf32, #tpu.memory_space<vmem>>) attributes {dimension_semantics = [#tpu.dimension_semantics<arbitrary>], iteration_bounds = array<i64: 1>, scalar_prefetch = 0 : i64, scratch_operands = 0 : i64, tpu.core_type = #tpu.core_type<tc>, window_params = [{pipeline_mode = #tpu.pipeline_mode<synchronous>, transform_indices = @transform_0, window_bounds = array<i64: 256, 256>}, {pipeline_mode = #tpu.pipeline_mode<synchronous>, transform_indices = @transform_1, window_bounds = array<i64: 256, 128>}, {pipeline_mode = #tpu.pipeline_mode<synchronous>, transform_indices = @transform_2, window_bounds = array<i64: 1, 128>}, {pipeline_mode = #tpu.pipeline_mode<synchronous>, transform_indices = @transform_3, window_bounds = array<i64: 128, 128>}, {pipeline_mode = #tpu.pipeline_mode<synchronous>, transform_indices = @transform_4, window_bounds = array<i64: 1, 128>}, {pipeline_mode = #tpu.pipeline_mode<synchronous>, transform_indices = @transform_5, window_bounds = array<i64: 128, 128>}, {pipeline_mode = #tpu.pipeline_mode<synchronous>, transform_indices = @transform_6, window_bounds = array<i64: 1, 128>}, {pipeline_mode = #tpu.pipeline_mode<synchronous>, transform_indices = @transform_7, window_bounds = array<i64: 128, 128>}, {pipeline_mode = #tpu.pipeline_mode<synchronous>, transform_indices = @transform_8, window_bounds = array<i64: 1, 128>}, {pipeline_mode = #tpu.pipeline_mode<synchronous>, transform_indices = @transform_9, window_bounds = array<i64: 256, 128>}]} {
    %c0 = arith.constant 0 : index
    %c0_0 = arith.constant 0 : index
    %0 = vector.load %arg1[%c0, %c0_0] : memref<256x256xbf16, #tpu.memory_space<vmem>>, vector<256x256xbf16>
    %c0_1 = arith.constant 0 : index
    %c0_2 = arith.constant 0 : index
    %1 = vector.load %arg2[%c0_1, %c0_2] : memref<256x128xbf16, #tpu.memory_space<vmem>>, vector<256x128xbf16>
    %cst = arith.constant dense<0.000000e+00> : vector<256x128xf32>
    %2 = tpu.matmul %0, %1, %cst {dimension_numbers = #tpu.dot_dimension_numbers<[1], [0], [0], [1], [0, 0, 1, 1], [], []>} : vector<256x256xbf16>, vector<256x128xbf16>, vector<256x128xf32> -> vector<256x128xf32>
    %c0_3 = arith.constant 0 : index
    %c0_4 = arith.constant 0 : index
    %3 = vector.load %arg3[%c0_3, %c0_4] : memref<1x128xf32, #tpu.memory_space<vmem>>, vector<1x128xf32>
    %4 = vector.broadcast %3 : vector<1x128xf32> to vector<256x128xf32>
    %5 = arith.addf %2, %4 : vector<256x128xf32>
    %cst_5 = arith.constant 0.000000e+00 : f32
    %6 = vector.broadcast %cst_5 : f32 to vector<256x128xf32>
    %7 = arith.maximumf %5, %6 : vector<256x128xf32>
    %8 = arith.truncf %7 : vector<256x128xf32> to vector<256x128xbf16>
    %c0_6 = arith.constant 0 : index
    %c0_7 = arith.constant 0 : index
    %9 = vector.load %arg4[%c0_6, %c0_7] : memref<128x128xbf16, #tpu.memory_space<vmem>>, vector<128x128xbf16>
    %cst_8 = arith.constant dense<0.000000e+00> : vector<256x128xf32>
    %10 = tpu.matmul %8, %9, %cst_8 {dimension_numbers = #tpu.dot_dimension_numbers<[1], [0], [0], [1], [0, 0, 1, 1], [], []>} : vector<256x128xbf16>, vector<128x128xbf16>, vector<256x128xf32> -> vector<256x128xf32>
    %11 = arith.truncf %10 : vector<256x128xf32> to vector<256x128xbf16>
    %cst_9 = arith.constant dense<0.000000e+00> : vector<256x128xf32>
    %12 = tpu.matmul %0, %11, %cst_9 {dimension_numbers = #tpu.dot_dimension_numbers<[1], [0], [0], [1], [0, 0, 1, 1], [], []>} : vector<256x256xbf16>, vector<256x128xbf16>, vector<256x128xf32> -> vector<256x128xf32>
    %c0_10 = arith.constant 0 : index
    %c0_11 = arith.constant 0 : index
    %13 = vector.load %arg5[%c0_10, %c0_11] : memref<1x128xf32, #tpu.memory_space<vmem>>, vector<1x128xf32>
    %14 = vector.broadcast %13 : vector<1x128xf32> to vector<256x128xf32>
    %15 = arith.addf %12, %14 : vector<256x128xf32>
    %16 = arith.truncf %15 : vector<256x128xf32> to vector<256x128xbf16>
    %c0_12 = arith.constant 0 : index
    %c0_13 = arith.constant 0 : index
    %17 = vector.load %arg6[%c0_12, %c0_13] : memref<128x128xbf16, #tpu.memory_space<vmem>>, vector<128x128xbf16>
    %cst_14 = arith.constant dense<0.000000e+00> : vector<256x128xf32>
    %18 = tpu.matmul %16, %17, %cst_14 {dimension_numbers = #tpu.dot_dimension_numbers<[1], [0], [0], [1], [0, 0, 1, 1], [], []>} : vector<256x128xbf16>, vector<128x128xbf16>, vector<256x128xf32> -> vector<256x128xf32>
    %c0_15 = arith.constant 0 : index
    %c0_16 = arith.constant 0 : index
    %19 = vector.load %arg7[%c0_15, %c0_16] : memref<1x128xf32, #tpu.memory_space<vmem>>, vector<1x128xf32>
    %20 = vector.broadcast %19 : vector<1x128xf32> to vector<256x128xf32>
    %21 = arith.addf %18, %20 : vector<256x128xf32>
    %cst_17 = arith.constant 0.000000e+00 : f32
    %22 = vector.broadcast %cst_17 : f32 to vector<256x128xf32>
    %23 = arith.maximumf %21, %22 : vector<256x128xf32>
    %24 = arith.truncf %23 : vector<256x128xf32> to vector<256x128xbf16>
    %c0_18 = arith.constant 0 : index
    %c0_19 = arith.constant 0 : index
    %25 = vector.load %arg8[%c0_18, %c0_19] : memref<128x128xbf16, #tpu.memory_space<vmem>>, vector<128x128xbf16>
    %cst_20 = arith.constant dense<0.000000e+00> : vector<256x128xf32>
    %26 = tpu.matmul %24, %25, %cst_20 {dimension_numbers = #tpu.dot_dimension_numbers<[1], [0], [0], [1], [0, 0, 1, 1], [], []>} : vector<256x128xbf16>, vector<128x128xbf16>, vector<256x128xf32> -> vector<256x128xf32>
    %c0_21 = arith.constant 0 : index
    %c0_22 = arith.constant 0 : index
    %27 = vector.load %arg9[%c0_21, %c0_22] : memref<1x128xf32, #tpu.memory_space<vmem>>, vector<1x128xf32>
    %28 = vector.broadcast %27 : vector<1x128xf32> to vector<256x128xf32>
    %29 = arith.addf %26, %28 : vector<256x128xf32>
    %c0_23 = arith.constant 0 : index
    %c0_24 = arith.constant 0 : index
    %30 = vector.load %arg10[%c0_23, %c0_24] : memref<256x128xf32, #tpu.memory_space<vmem>>, vector<256x128xf32>
    tpu.vector_store %arg10[%c0_23, %c0_24], %29 {strides = array<i32>} : memref<256x128xf32, #tpu.memory_space<vmem>>, vector<256x128xf32>,
    return
  }
  func.func @transform_0(%arg0: i32) -> (i32, i32) {
    %c0_i32 = arith.constant 0 : i32
    %c0_i32_0 = arith.constant 0 : i32
    %c0_i32_1 = arith.constant 0 : i32
    return %c0_i32, %c0_i32_0 : i32, i32
  }
  func.func @transform_1(%arg0: i32) -> (i32, i32) {
    %c0_i32 = arith.constant 0 : i32
    %c0_i32_0 = arith.constant 0 : i32
    %c0_i32_1 = arith.constant 0 : i32
    return %c0_i32, %c0_i32_0 : i32, i32
  }
  func.func @transform_2(%arg0: i32) -> (i32, i32) {
    %c0_i32 = arith.constant 0 : i32
    %c0_i32_0 = arith.constant 0 : i32
    %c0_i32_1 = arith.constant 0 : i32
    return %c0_i32, %c0_i32_0 : i32, i32
  }
  func.func @transform_3(%arg0: i32) -> (i32, i32) {
    %c0_i32 = arith.constant 0 : i32
    %c0_i32_0 = arith.constant 0 : i32
    %c0_i32_1 = arith.constant 0 : i32
    return %c0_i32, %c0_i32_0 : i32, i32
  }
  func.func @transform_4(%arg0: i32) -> (i32, i32) {
    %c0_i32 = arith.constant 0 : i32
    %c0_i32_0 = arith.constant 0 : i32
    %c0_i32_1 = arith.constant 0 : i32
    return %c0_i32, %c0_i32_0 : i32, i32
  }
  func.func @transform_5(%arg0: i32) -> (i32, i32) {
    %c0_i32 = arith.constant 0 : i32
    %c0_i32_0 = arith.constant 0 : i32
    %c0_i32_1 = arith.constant 0 : i32
    return %c0_i32, %c0_i32_0 : i32, i32
  }
  func.func @transform_6(%arg0: i32) -> (i32, i32) {
    %c0_i32 = arith.constant 0 : i32
    %c0_i32_0 = arith.constant 0 : i32
    %c0_i32_1 = arith.constant 0 : i32
    return %c0_i32, %c0_i32_0 : i32, i32
  }
  func.func @transform_7(%arg0: i32) -> (i32, i32) {
    %c0_i32 = arith.constant 0 : i32
    %c0_i32_0 = arith.constant 0 : i32
    %c0_i32_1 = arith.constant 0 : i32
    return %c0_i32, %c0_i32_0 : i32, i32
  }
  func.func @transform_8(%arg0: i32) -> (i32, i32) {
    %c0_i32 = arith.constant 0 : i32
    %c0_i32_0 = arith.constant 0 : i32
    %c0_i32_1 = arith.constant 0 : i32
    return %c0_i32, %c0_i32_0 : i32, i32
  }
  func.func @transform_9(%arg0: i32) -> (i32, i32) {
    %c0_i32 = arith.constant 0 : i32
    %c0_i32_0 = arith.constant 0 : i32
    %c0_i32_1 = arith.constant 0 : i32
    return %c0_i32, %c0_i32_0 : i32, i32
  }
}

</mosaic_0001>

<bundles_post_ra>
// kernel: tpu_custom_call.1
= control target key start
LH: loop header
LB: loop body
LE: loop exit
PB: predicated region body
PF: predicated region fallthrough
CT: control target
= control target key end

     0   :  { %14 = vsyncpa [#allocation3], 0  ;;  %s2834_s0 = inlined_call_operand.hbm [shape: bf16[256,256], index: 0, kind: input, shape index: {}]   ;;  %s2835_s1 = inlined_call_operand.hbm [shape: bf16[256,128], index: 1, kind: input, shape index: {}]   ;;  %s2836_s2 = inlined_call_operand.vmem [shape: f32[1,128], index: 2, kind: input, shape index: {}]   ;;  %s2837_s3 = inlined_call_operand.hbm [shape: bf16[128,128], index: 3, kind: input, shape index: {}]   ;;  %s2838_s4 = inlined_call_operand.vmem [shape: f32[1,128], index: 4, kind: input, shape index: {}]   ;;  %s2839_s5 = inlined_call_operand.hbm [shape: bf16[128,128], index: 5, kind: input, shape index: {}]   ;;  %s2840_s6 = inlined_call_operand.vmem [shape: f32[1,128], index: 6, kind: input, shape index: {}]   ;;  %s2841_s7 = inlined_call_operand.hbm [shape: bf16[128,128], index: 7, kind: input, shape index: {}]   ;;  %s2842_s8 = inlined_call_operand.vmem [shape: f32[1,128], index: 8, kind: input, shape index: {}]   ;;  %s2843_s9 = inlined_call_operand.hbm [shape: f32[256,128], index: 9, kind: output, shape index: {}]  }
   0x1   :  { %15 = vsyncpa [#allocation6], 0 }
   0x2   :  { %16 = vsyncpa [#allocation9], 0 }
   0x3   :  { %17 = vsyncpa [#allocation4], 0  ;;  %s2396_s30 = smov [#allocation5]   ;;  %s2256_s13 = scalar_lea.hbm %s2835_s1, 2048 }
   0x4   :  { %s35_s10 = sshll.u32 %s2396_s30, 4  ;;  %p2257_p0 = scmp.ne.s32.totalorder %s2835_s1, %s2256_s13  ;;  %s36_s10 = int_to_ptr.vmem [resolvable:$true] %s35_s10 }
   0x5   :  { %p2260_p1 = scmp.lt.u32.totalorder %s2256_s13, %s2835_s1 }
   0x7   :  { %p2262_p2 = pnand %p2260_p1, %p2257_p0 }
   0x9   :  { %2265 = shalt.err (!%p2262_p2)
}
   0xa   :  { %s2266_s18 = scalar_lea.vmem %s36_s10, 2048  ;;  %p2271_p4 = scmp.lt.s32.totalorder %s36_s10, %s36_s10 }
   0xb   :  { %p2267_p3 = scmp.ne.s32.totalorder %s36_s10, %s2266_s18  ;;  %p2272_p5 = scmp.lt.s32.totalorder %s2266_s18, %s2266_s18 }
   0xd   :  { %p2273_p6 = por %p2272_p5, %p2271_p4 }
   0xf   :  { %p2274_p7 = pnand %p2273_p6, %p2267_p3 }
  0x11   :  { %2277 = shalt.err (!%p2274_p7)
}
  0x12   :  { %s2397_s19 = smov 64   ;;  %s2398_s20 = smov 4  }
  0x13   :  { %41 = dma.hbm_to_vmem [thread:$0]  %s2835_s1, 2048, %s36_s10, [#allocation6], %s2397_s19, %s2397_s19, %s2398_s20  }
  0x14   :  { %s2399_s23 = smov [#allocation8]   ;;  %s2400_s25 = smov [#allocation2]  }
  0x15   :  { %s63_s24 = sshll.u32 %s2399_s23, 4  ;;  %s23_s26 = sshll.u32 %s2400_s25, 4  ;;  %s64_s24 = int_to_ptr.vmem [resolvable:$true] %s63_s24  ;;  %s24_s26 = int_to_ptr.vmem [resolvable:$true] %s23_s26 }
  0x16   :  { %s2278_s29 = scalar_lea.hbm %s2839_s5, 1024 }
  0x17   :  { %p2279_p8 = scmp.ne.s32.totalorder %s2839_s5, %s2278_s29  ;;  %p2282_p9 = scmp.lt.u32.totalorder %s2278_s29, %s2839_s5 }
  0x19   :  { %p2284_p10 = pnand %p2282_p9, %p2279_p8 }
  0x1b   :  { %2287 = shalt.err (!%p2284_p10)
}
  0x1c   :  { %s2288_s1 = scalar_lea.vmem %s64_s24, 1024  ;;  %p2293_p12 = scmp.lt.s32.totalorder %s64_s24, %s64_s24 }
  0x1d   :  { %p2289_p11 = scmp.ne.s32.totalorder %s64_s24, %s2288_s1  ;;  %p2294_p13 = scmp.lt.s32.totalorder %s2288_s1, %s2288_s1 }
  0x1f   :  { %p2295_p0 = por %p2294_p13, %p2293_p12 }
  0x21   :  { %p2296_p1 = pnand %p2295_p0, %p2289_p11 }
  0x23   :  { %2299 = shalt.err (!%p2296_p1)
}
  0x24   :  { %69 = dma.hbm_to_vmem [thread:$0]  %s2839_s5, 1024, %s64_s24, [#allocation9], %s2397_s19, %s2397_s19, %s2398_s20  }
  0x25   :  { %s2300_s17 = scalar_lea.hbm %s2834_s0, 4096 }
  0x26   :  { %p2301_p2 = scmp.ne.s32.totalorder %s2834_s0, %s2300_s17  ;;  %p2304_p3 = scmp.lt.u32.totalorder %s2300_s17, %s2834_s0 }
  0x28   :  { %p2306_p4 = pnand %p2304_p3, %p2301_p2 }
  0x2a   :  { %2309 = shalt.err (!%p2306_p4)
}
  0x2b   :  { %s2310_s25 = scalar_lea.vmem %s24_s26, 4096  ;;  %p2315_p6 = scmp.lt.s32.totalorder %s24_s26, %s24_s26 }
  0x2c   :  { %p2311_p5 = scmp.ne.s32.totalorder %s24_s26, %s2310_s25  ;;  %p2316_p7 = scmp.lt.s32.totalorder %s2310_s25, %s2310_s25 }
  0x2e   :  { %p2317_p8 = por %p2316_p7, %p2315_p6 }
  0x30   :  { %p2318_p9 = pnand %p2317_p8, %p2311_p5 }
  0x32   :  { %2321 = shalt.err (!%p2318_p9)
}
  0x33   :  { %s2401_s5 = smov 128   ;;  %s2402_s24 = smov 8  }
  0x34   :  { %29 = dma.hbm_to_vmem [thread:$0]  %s2834_s0, 4096, %s24_s26, [#allocation3], %s2401_s5, %s2401_s5, %s2402_s24  }
  0x35   :  { %s2403_s29 = smov [#allocation7]   ;;  %s2404_s11 = smov [#allocation10]  }
  0x36   :  { %s49_s30 = sshll.u32 %s2403_s29, 4  ;;  %s77_s12 = sshll.u32 %s2404_s11, 4  ;;  %s50_s30 = int_to_ptr.vmem [resolvable:$true] %s49_s30  ;;  %s78_s12 = int_to_ptr.vmem [resolvable:$true] %s77_s12 }
  0x37   :  { %s2322_s10 = scalar_lea.hbm %s2837_s3, 1024 }
  0x38   :  { %p2323_p10 = scmp.ne.s32.totalorder %s2837_s3, %s2322_s10  ;;  %p2326_p11 = scmp.lt.u32.totalorder %s2322_s10, %s2837_s3 }
  0x3a   :  { %p2328_p12 = pnand %p2326_p11, %p2323_p10 }
  0x3c   :  { %2331 = shalt.err (!%p2328_p12)
}
  0x3d   :  { %s2332_s0 = scalar_lea.vmem %s50_s30, 1024  ;;  %p2337_p0 = scmp.lt.s32.totalorder %s50_s30, %s50_s30 }
  0x3e   :  { %p2333_p13 = scmp.ne.s32.totalorder %s50_s30, %s2332_s0  ;;  %p2338_p1 = scmp.lt.s32.totalorder %s2332_s0, %s2332_s0 }
  0x40   :  { %p2339_p2 = por %p2338_p1, %p2337_p0 }
  0x42   :  { %p2340_p3 = pnand %p2339_p2, %p2333_p13 }
  0x44   :  { %2343 = shalt.err (!%p2340_p3)
}
  0x45   :  { %55 = dma.hbm_to_vmem [thread:$0]  %s2837_s3, 1024, %s50_s30, [#allocation6], %s2397_s19, %s2397_s19, %s2398_s20  }
  0x46   :  { %s2344_s23 = scalar_lea.hbm %s2841_s7, 1024 }
  0x47   :  { %p2345_p4 = scmp.ne.s32.totalorder %s2841_s7, %s2344_s23  ;;  %p2348_p5 = scmp.lt.u32.totalorder %s2344_s23, %s2841_s7 }
  0x49   :  { %p2350_p6 = pnand %p2348_p5, %p2345_p4 }
  0x4b   :  { %2353 = shalt.err (!%p2350_p6)
}
  0x4c   :  { %s2354_s11 = scalar_lea.vmem %s78_s12, 1024  ;;  %p2359_p8 = scmp.lt.s32.totalorder %s78_s12, %s78_s12 }
  0x4d   :  { %p2355_p7 = scmp.ne.s32.totalorder %s78_s12, %s2354_s11  ;;  %p2360_p9 = scmp.lt.s32.totalorder %s2354_s11, %s2354_s11 }
  0x4f   :  { %p2361_p10 = por %p2360_p9, %p2359_p8 }
  0x51   :  { %p2362_p11 = pnand %p2361_p10, %p2355_p7 }
  0x53   :  { %2365 = shalt.err (!%p2362_p11)
}
  0x54   :  { %83 = dma.hbm_to_vmem [thread:$0]  %s2841_s7, 1024, %s78_s12, [#allocation9], %s2397_s19, %s2397_s19, %s2398_s20  }
  0x55   :  { %2388 = dma.done.wait [#allocation3], 4096  }
  0x56   :  { %2389 = vsyncadd [#allocation3], 4294963200 }
  0x57   :  { %2390 = dma.done.wait [#allocation6], 3072  }
  0x58   :  { %2391 = vsyncadd [#allocation6], 4294964224 }
  0x59   :  { %2392 = dma.done.wait [#allocation9], 2048  }
  0x5a   :  { %2393 = vsyncadd [#allocation9], 4294965248  ;;  %v2168_v0 = vld [vmem:[#allocation5 + $0x40] sm:$0xff]   ;;  %v2170_v2 = vld [vmem:[#allocation5 + $0x48] sm:$0xff]  }
  0x5b   :  { %v2169_v1 = vld [vmem:[#allocation5] sm:$0xff]   ;;  %1702 = vmatprep.subr.bf16.mxu0 %v2168_v0  ;;  %2142 = vmatprep.subr.bf16.mxu1 %v2168_v0  ;;  %v2171_v3 = vld [vmem:[#allocation5 + $0x8] sm:$0xff]   ;;  %v2172_v4 = vld [vmem:[#allocation5 + $0x50] sm:$0xff]  }
  0x5c   :  { %1703 = vmatpush3.bf16.msra.mxu0 %v2169_v1  ;;  %2150 = vmatpush3.bf16.msra.mxu1 %v2169_v1  ;;  %v2173_v5 = vld [vmem:[#allocation5 + $0x10] sm:$0xff]   ;;  %v2174_v6 = vld [vmem:[#allocation5 + $0x58] sm:$0xff]   ;;  %v2176_v8 = vld [vmem:[#allocation5 + $0x60] sm:$0xff]  }
  0x5d   :  { %1704 = vmatprep.subr.bf16.mxu0 %v2170_v2  ;;  %2143 = vmatprep.subr.bf16.mxu1 %v2170_v2  ;;  %v2175_v7 = vld [vmem:[#allocation5 + $0x18] sm:$0xff]   ;;  %v2177_v9 = vld [vmem:[#allocation5 + $0x20] sm:$0xff]   ;;  %v2178_v10 = vld [vmem:[#allocation5 + $0x68] sm:$0xff]  }
  0x5e   :  { %v2531_v11 = vld [vmem:[#allocation2 + $0x4] ss:$8 sps:$4 sm:$0xff]   ;;  %v2180_v13 = vld [vmem:[#allocation5 + $0x70] sm:$0xff]   ;;  %v2182_v15 = vld [vmem:[#allocation5 + $0x78] sm:$0xff]  }
  0x5f   :  { %v2179_v12 = vld [vmem:[#allocation5 + $0x28] sm:$0xff]   ;;  %461 = vmatprep.mubr.bf16.mxu0 %v2531_v11  ;;  %v2181_v14 = vld [vmem:[#allocation5 + $0x30] sm:$0xff]   ;;  %v2183_v16 = vld [vmem:[#allocation5 + $0x38] sm:$0xff]  }
  0x60   :  { %1705 = vmatpush3.bf16.msra.mxu0 %v2171_v3  ;;  %2151 = vmatpush3.bf16.msra.mxu1 %v2171_v3  ;;  %v2534_v17 = vld [vmem:[#allocation2] ss:$8 sps:$4 sm:$0xff]   ;;  %v2536_v18 = vld [vmem:[#allocation2 + $0x14] ss:$8 sps:$4 sm:$0xff]   ;;  %v2540_v20 = vld [vmem:[#allocation2 + $0xc4] ss:$8 sps:$4 sm:$0xff]  }
  0x61   :  { %1706 = vmatprep.subr.bf16.mxu0 %v2172_v4  ;;  %2144 = vmatprep.subr.bf16.mxu1 %v2172_v4  ;;  %v2538_v19 = vld [vmem:[#allocation2 + $0xc0] ss:$8 sps:$4 sm:$0xff]   ;;  %v2543_v21 = vld [vmem:[#allocation2 + $0xd4] ss:$8 sps:$4 sm:$0xff]   ;;  %v2548_v22 = vld [vmem:[#allocation2 + $0x10] ss:$8 sps:$4 sm:$0xff]  }
  0x62   :  { %557 = vmatprep.mubr.bf16.mxu1 %v2540_v20  ;;  %v2551_v23 = vld [vmem:[#allocation2 + $0x24] ss:$8 sps:$4 sm:$0xff]   ;;  %v2553_v24 = vld [vmem:[#allocation2 + $0xd0] ss:$8 sps:$4 sm:$0xff]   ;;  %v2560_v29 = vld [vmem:[#allocation2 + $0x20] ss:$8 sps:$4 sm:$0xff]  }
  0x63   :  { %v2555_v25 = vld [vmem:[#allocation2 + $0xe4] ss:$8 sps:$4 sm:$0xff]   ;;  %v2234_v28 = vld [vmem:[#allocation7 + $0x10] sm:$0xff]   ;;  %v2565_v31 = vld [vmem:[#allocation2 + $0xe0] ss:$8 sps:$4 sm:$0xff]  }
  0x64   :  { %1707 = vmatpush3.bf16.msra.mxu0 %v2173_v5  ;;  %2152 = vmatpush3.bf16.msra.mxu1 %v2173_v5  ;;  %v2232_v26 = vld [vmem:[#allocation7] sm:$0xff]   ;;  %v2233_v27 = vld [vmem:[#allocation7 + $0x8] sm:$0xff]   ;;  %v2563_v30 = vld [vmem:[#allocation2 + $0x34] ss:$8 sps:$4 sm:$0xff]  }
  0x65   :  { %1708 = vmatprep.subr.bf16.mxu0 %v2174_v6  ;;  %2145 = vmatprep.subr.bf16.mxu1 %v2174_v6  ;;  %v2567_v32 = vld [vmem:[#allocation2 + $0xf4] ss:$8 sps:$4 sm:$0xff]   ;;  %v2573_v33 = vld [vmem:[#allocation2 + $0x30] ss:$8 sps:$4 sm:$0xff]   ;;  %v2575_v34 = vld [vmem:[#allocation2 + $0x44] ss:$8 sps:$4 sm:$0xff]  }
  0x66   :  { %v2577_v35 = vld [vmem:[#allocation2 + $0xf0] ss:$8 sps:$4 sm:$0xff]   ;;  %v2582_v36 = vld [vmem:[#allocation2 + $0x40] ss:$8 sps:$4 sm:$0xff]   ;;  %v2584_v37 = vld [vmem:[#allocation2 + $0x54] ss:$8 sps:$4 sm:$0xff]  }
  0x67   :  { %v2588_v38 = vld [vmem:[#allocation2 + $0x50] ss:$8 sps:$4 sm:$0xff]   ;;  %v2590_v39 = vld [vmem:[#allocation2 + $0x64] ss:$8 sps:$4 sm:$0xff]   ;;  %v2594_v40 = vld [vmem:[#allocation2 + $0x60] ss:$8 sps:$4 sm:$0xff]  }
  0x68   :  { %1709 = vmatpush3.bf16.msra.mxu0 %v2175_v7  ;;  %2153 = vmatpush3.bf16.msra.mxu1 %v2175_v7  ;;  %v2596_v41 = vld [vmem:[#allocation2 + $0x74] ss:$8 sps:$4 sm:$0xff]   ;;  %v2600_v42 = vld [vmem:[#allocation2 + $0x70] ss:$8 sps:$4 sm:$0xff]   ;;  %v2602_v43 = vld [vmem:[#allocation2 + $0x84] ss:$8 sps:$4 sm:$0xff]  }
  0x69   :  { %1710 = vmatprep.subr.bf16.mxu0 %v2176_v8  ;;  %2146 = vmatprep.subr.bf16.mxu1 %v2176_v8  ;;  %v2606_v44 = vld [vmem:[#allocation2 + $0x80] ss:$8 sps:$4 sm:$0xff]   ;;  %v2608_v45 = vld [vmem:[#allocation2 + $0x94] ss:$8 sps:$4 sm:$0xff]   ;;  %v2612_v46 = vld [vmem:[#allocation2 + $0x90] ss:$8 sps:$4 sm:$0xff]  }
  0x6a   :  { %v2614_v47 = vld [vmem:[#allocation2 + $0xa4] ss:$8 sps:$4 sm:$0xff]   ;;  %v2618_v48 = vld [vmem:[#allocation2 + $0xa0] ss:$8 sps:$4 sm:$0xff]   ;;  %v2620_v49 = vld [vmem:[#allocation2 + $0xb4] ss:$8 sps:$4 sm:$0xff]  }
  0x6b   :  { %v2235_v50 = vld [vmem:[#allocation7 + $0x18] sm:$0xff]   ;;  %v2236_v52 = vld [vmem:[#allocation7 + $0x20] sm:$0xff]   ;;  %v2237_v53 = vld [vmem:[#allocation7 + $0x28] sm:$0xff]  }
  0x6c   :  { %1711 = vmatpush3.bf16.msra.mxu0 %v2177_v9  ;;  %2154 = vmatpush3.bf16.msra.mxu1 %v2177_v9  ;;  %v2624_v51 = vld [vmem:[#allocation2 + $0xb0] ss:$8 sps:$4 sm:$0xff]   ;;  %v2630_v57 = vld [vmem:[%s2836_s2] ss:$0 sm:$0xff] }
  0x6d   :  { %1712 = vmatprep.subr.bf16.mxu0 %v2178_v10  ;;  %2147 = vmatprep.subr.bf16.mxu1 %v2178_v10  ;;  %v2238_v54 = vld [vmem:[#allocation7 + $0x30] sm:$0xff]   ;;  %v2239_v55 = vld [vmem:[#allocation7 + $0x38] sm:$0xff]  }
  0x70   :  { %1713 = vmatpush3.bf16.msra.mxu0 %v2179_v12  ;;  %2155 = vmatpush3.bf16.msra.mxu1 %v2179_v12 }
  0x71   :  { %1714 = vmatprep.subr.bf16.mxu0 %v2180_v13  ;;  %2148 = vmatprep.subr.bf16.mxu1 %v2180_v13 }
  0x74   :  { %1715 = vmatpush3.bf16.msra.mxu0 %v2181_v14  ;;  %2156 = vmatpush3.bf16.msra.mxu1 %v2181_v14 }
  0x75   :  { %1716 = vmatprep.subr.bf16.mxu0 %v2182_v15  ;;  %2149 = vmatprep.subr.bf16.mxu1 %v2182_v15 }
  0x78   :  { %1717 = vmatpush3.bf16.msra.mxu0 %v2183_v16  ;;  %2157 = vmatpush3.bf16.msra.mxu1 %v2183_v16 }
  0x79   :  { %1998 = vmatprep.subr.bf16.mxu1 %v2232_v26 }
  0x7b   :  { %462 = vmatmul.mubr.bf16.vlgmr.msra.gmra.mrb[0].mxu0 %v2534_v17  ;;  %558 = vmatmul.mubr.bf16.vlgmr.msra.gmra.mrb[0].mxu1 %v2538_v19 }
  0x7c   :  { %469 = vmatprep.mubr.bf16.mxu0 %v2536_v18  ;;  %565 = vmatprep.mubr.bf16.mxu1 %v2543_v21 }
  0x7d   :  { %1999 = vmatpush3.bf16.msra.mxu1 %v2232_v26 }
  0x7e   :  { %2000 = vmatprep.subr.bf16.mxu1 %v2233_v27 }
  0x81   :  { %2001 = vmatpush3.bf16.msra.mxu1 %v2233_v27 }
  0x82   :  { %2002 = vmatprep.subr.bf16.mxu1 %v2234_v28 }
  0x83   :  { %470 = vmatmul.mubr.bf16.gmra.mrb[4].mxu0 %v2548_v22  ;;  %566 = vmatmul.mubr.bf16.gmra.mrb[4].mxu1 %v2553_v24 }
  0x84   :  { %477 = vmatprep.mubr.bf16.mxu0 %v2551_v23  ;;  %573 = vmatprep.mubr.bf16.mxu1 %v2555_v25 }
  0x85   :  { %2003 = vmatpush3.bf16.msra.mxu1 %v2234_v28 }
  0x86   :  { %2004 = vmatprep.subr.bf16.mxu1 %v2235_v50 }
  0x89   :  { %2005 = vmatpush3.bf16.msra.mxu1 %v2235_v50 }
  0x8a   :  { %2006 = vmatprep.subr.bf16.mxu1 %v2236_v52 }
  0x8b   :  { %478 = vmatmul.mubr.bf16.gmra.mrb[8].mxu0 %v2560_v29  ;;  %574 = vmatmul.mubr.bf16.gmra.mrb[8].mxu1 %v2565_v31 }
  0x8c   :  { %485 = vmatprep.mubr.bf16.mxu0 %v2563_v30  ;;  %581 = vmatprep.mubr.bf16.mxu1 %v2567_v32 }
  0x8d   :  { %2007 = vmatpush3.bf16.msra.mxu1 %v2236_v52 }
  0x8e   :  { %2008 = vmatprep.subr.bf16.mxu1 %v2237_v53 }
  0x91   :  { %2009 = vmatpush3.bf16.msra.mxu1 %v2237_v53 }
  0x92   :  { %2010 = vmatprep.subr.bf16.mxu1 %v2238_v54 }
  0x93   :  { %486 = vmatmul.mubr.bf16.gmra.mrb[12].mxu0 %v2573_v33  ;;  %582 = vmatmul.mubr.bf16.gmra.mrb[12].mxu1 %v2577_v35 }
  0x94   :  { %493 = vmatprep.mubr.bf16.mxu0 %v2575_v34 }
  0x95   :  { %2011 = vmatpush3.bf16.msra.mxu1 %v2238_v54 }
  0x96   :  { %2012 = vmatprep.subr.bf16.mxu1 %v2239_v55 }
  0x99   :  { %2013 = vmatpush3.bf16.msra.mxu1 %v2239_v55 }
  0x9b   :  { %494 = vmatmul.mubr.bf16.gmra.mrb[16].mxu0 %v2582_v36 }
  0x9c   :  { %501 = vmatprep.mubr.bf16.mxu0 %v2584_v37 }
  0xa3   :  { %502 = vmatmul.mubr.bf16.gmra.mrb[20].mxu0 %v2588_v38 }
  0xa4   :  { %509 = vmatprep.mubr.bf16.mxu0 %v2590_v39 }
  0xab   :  { %510 = vmatmul.mubr.bf16.gmra.mrb[24].mxu0 %v2594_v40 }
  0xac   :  { %517 = vmatprep.mubr.bf16.mxu0 %v2596_v41 }
  0xb3   :  { %518 = vmatmul.mubr.bf16.gmra.mrb[28].mxu0 %v2600_v42 }
  0xb4   :  { %525 = vmatprep.mubr.bf16.mxu0 %v2602_v43 }
  0xbb   :  { %526 = vmatmul.mubr.bf16.gmra.mrb[32].mxu0 %v2606_v44 }
  0xbc   :  { %533 = vmatprep.mubr.bf16.mxu0 %v2608_v45 }
  0xc3   :  { %534 = vmatmul.mubr.bf16.gmra.mrb[36].mxu0 %v2612_v46 }
  0xc4   :  { %541 = vmatprep.mubr.bf16.mxu0 %v2614_v47 }
  0xcb   :  { %542 = vmatmul.mubr.bf16.gmra.mrb[40].mxu0 %v2618_v48 }
  0xcc   :  { %549 = vmatprep.mubr.bf16.mxu0 %v2620_v49 }
  0xd3   :  { %550 = vmatmul.mubr.bf16.gmra.mrb[44].mxu0 %v2624_v51 }
 0x14e   :  { %v1718_v56 = vpop.f32.mrb[0].mxu0  ;;  %v1790_v59 = vpop.f32.mrb[0].mxu1 }
 0x14f   :  { %v1719_v58 = vpop.f32.mrb[1].mxu0  ;;  %v1791_v62 = vpop.f32.mrb[1].mxu1 }
 0x150   :  { %v1720_v60 = vadd.f32 %v1719_v58, %v1718_v56  ;;  %v1721_v61 = vpop.f32.mrb[2].mxu0  ;;  %v1792_v0 = vadd.f32 %v1791_v62, %v1790_v59  ;;  %v1793_v1 = vpop.f32.mrb[2].mxu1 }
 0x151   :  { %v1722_v63 = vpop.f32.mrb[3].mxu0  ;;  %v1794_v4 = vpop.f32.mrb[3].mxu1 }
 0x152   :  { %v464_v2 = vadd.f32 %v1720_v60, %v2630_v57  ;;  %v1723_v3 = vadd.f32 %v1722_v63, %v1721_v61  ;;  %v560_v5 = vadd.f32 %v1792_v0, %v2630_v57  ;;  %v1795_v6 = vadd.f32 %v1794_v4, %v1793_v1 }
 0x154   :  { %v467_v7 = vadd.f32 %v1723_v3, %v2630_v57  ;;  %v614_v8 = vmax.f32 %v560_v5, 0.0  ;;  %v563_v9 = vadd.f32 %v1795_v6, %v2630_v57  ;;  %v590_v10 = vmax.f32 %v464_v2, 0.0 }
 0x156   :  { %v591_v12 = vmax.f32 %v467_v7, 0.0  ;;  %v1724_v13 = vpop.f32.mrb[4].mxu0  ;;  %v615_v15 = vmax.f32 %v563_v9, 0.0  ;;  %v1796_v16 = vpop.f32.mrb[4].mxu1 }
 0x157   :  { %v1725_v14 = vpop.f32.mrb[5].mxu0  ;;  %v1797_v50 = vpop.f32.mrb[5].mxu1 }
 0x158   :  { %v1726_v26 = vadd.f32 %v1725_v14, %v1724_v13  ;;  %v1727_v27 = vpop.f32.mrb[6].mxu0  ;;  %v622_v28 = vpack.c.bf16 %v591_v12, %v590_v10  ;;  %v1798_v53 = vadd.f32 %v1797_v50, %v1796_v16  ;;  %v1799_v54 = vpop.f32.mrb[6].mxu1  ;;  %v2636_v55 = vpack.c.bf16 %v615_v15, %v614_v8 }
 0x159   :  { %v1728_v52 = vpop.f32.mrb[7].mxu0  ;;  %v1800_v59 = vpop.f32.mrb[7].mxu1 }
 0x15a   :  { %v472_v56 = vadd.f32 %v1726_v26, %v2630_v57  ;;  %v1729_v58 = vadd.f32 %v1728_v52, %v1727_v27  ;;  %2014 = vmatprep.mubr.bf16.mxu1 %v622_v28  ;;  %v568_v60 = vadd.f32 %v1798_v53, %v2630_v57  ;;  %v1801_v61 = vadd.f32 %v1800_v59, %v1799_v54 }
 0x15c   :  { %v475_v62 = vadd.f32 %v1729_v58, %v2630_v57  ;;  %v616_v63 = vmax.f32 %v568_v60, 0.0  ;;  %v571_v0 = vadd.f32 %v1801_v61, %v2630_v57  ;;  %v592_v1 = vmax.f32 %v472_v56, 0.0 }
 0x15e   :  { %v593_v2 = vmax.f32 %v475_v62, 0.0  ;;  %v1730_v3 = vpop.f32.mrb[8].mxu0  ;;  %v617_v5 = vmax.f32 %v571_v0, 0.0  ;;  %v1802_v6 = vpop.f32.mrb[8].mxu1 }
 0x15f   :  { %v1731_v4 = vpop.f32.mrb[9].mxu0  ;;  %v1803_v10 = vpop.f32.mrb[9].mxu1 }
 0x160   :  { %v623_v7 = vpack.c.bf16 %v593_v2, %v592_v1  ;;  %v1732_v8 = vadd.f32 %v1731_v4, %v1730_v3  ;;  %v1733_v9 = vpop.f32.mrb[10].mxu0  ;;  %v1804_v13 = vadd.f32 %v1803_v10, %v1802_v6  ;;  %v1805_v14 = vpop.f32.mrb[10].mxu1  ;;  %v2642_v15 = vpack.c.bf16 %v617_v5, %v616_v63 }
 0x161   :  { %v1734_v12 = vpop.f32.mrb[11].mxu0  ;;  %v1806_v27 = vpop.f32.mrb[11].mxu1 }
 0x162   :  { %v480_v16 = vadd.f32 %v1732_v8, %v2630_v57  ;;  %v1735_v26 = vadd.f32 %v1734_v12, %v1733_v9  ;;  %2015 = vmatmul.mubr.bf16.vlgmr.msra.gmra.mrb[16].mxu1 %v623_v7  ;;  %v576_v28 = vadd.f32 %v1804_v13, %v2630_v57  ;;  %v1807_v50 = vadd.f32 %v1806_v27, %v1805_v14 }
 0x164   :  { %v483_v52 = vadd.f32 %v1735_v26, %v2630_v57  ;;  %v618_v53 = vmax.f32 %v576_v28, 0.0  ;;  %v579_v54 = vadd.f32 %v1807_v50, %v2630_v57  ;;  %v594_v56 = vmax.f32 %v480_v16, 0.0 }
 0x166   :  { %v595_v58 = vmax.f32 %v483_v52, 0.0  ;;  %v1736_v59 = vpop.f32.mrb[12].mxu0  ;;  %v619_v61 = vmax.f32 %v579_v54, 0.0  ;;  %v1808_v62 = vpop.f32.mrb[12].mxu1 }
 0x167   :  { %v1737_v60 = vpop.f32.mrb[13].mxu0  ;;  %v1809_v2 = vpop.f32.mrb[13].mxu1 }
 0x168   :  { %v1738_v63 = vadd.f32 %v1737_v60, %v1736_v59  ;;  %v1739_v0 = vpop.f32.mrb[14].mxu0  ;;  %v624_v1 = vpack.c.bf16 %v595_v58, %v594_v56  ;;  %v1810_v4 = vadd.f32 %v1809_v2, %v1808_v62  ;;  %v1811_v5 = vpop.f32.mrb[14].mxu1  ;;  %v2648_v6 = vpack.c.bf16 %v619_v61, %v618_v53 }
 0x169   :  { %v1740_v3 = vpop.f32.mrb[15].mxu0  ;;  %v1812_v9 = vpop.f32.mrb[15].mxu1 }
 0x16a   :  { %v488_v7 = vadd.f32 %v1738_v63, %v2630_v57  ;;  %v1741_v8 = vadd.f32 %v1740_v3, %v1739_v0  ;;  %2018 = vmatprep.mubr.bf16.mxu1 %v624_v1  ;;  %v584_v10 = vadd.f32 %v1810_v4, %v2630_v57  ;;  %v1813_v12 = vadd.f32 %v1812_v9, %v1811_v5 }
 0x16c   :  { %v491_v13 = vadd.f32 %v1741_v8, %v2630_v57  ;;  %v620_v14 = vmax.f32 %v584_v10, 0.0  ;;  %v587_v16 = vadd.f32 %v1813_v12, %v2630_v57  ;;  %v596_v26 = vmax.f32 %v488_v7, 0.0 }
 0x16e   :  { %v597_v27 = vmax.f32 %v491_v13, 0.0  ;;  %v1742_v28 = vpop.f32.mrb[16].mxu0  ;;  %v621_v52 = vmax.f32 %v587_v16, 0.0 }
 0x16f   :  { %v1743_v50 = vpop.f32.mrb[17].mxu0 }
 0x170   :  { %v1744_v53 = vadd.f32 %v1743_v50, %v1742_v28  ;;  %v1745_v54 = vpop.f32.mrb[18].mxu0  ;;  %v625_v56 = vpack.c.bf16 %v597_v27, %v596_v26  ;;  %v2654_v59 = vpack.c.bf16 %v621_v52, %v620_v14 }
 0x171   :  { %v1746_v58 = vpop.f32.mrb[19].mxu0 }
 0x172   :  { %v496_v60 = vadd.f32 %v1744_v53, %v2630_v57  ;;  %v1747_v61 = vadd.f32 %v1746_v58, %v1745_v54  ;;  %2019 = vmatmul.mubr.bf16.gmra.mrb[20].mxu1 %v625_v56 }
 0x174   :  { %v499_v62 = vadd.f32 %v1747_v61, %v2630_v57  ;;  %v598_v63 = vmax.f32 %v496_v60, 0.0 }
 0x176   :  { %v599_v0 = vmax.f32 %v499_v62, 0.0  ;;  %v1748_v1 = vpop.f32.mrb[20].mxu0 }
 0x177   :  { %v1749_v2 = vpop.f32.mrb[21].mxu0 }
 0x178   :  { %v1750_v3 = vadd.f32 %v1749_v2, %v1748_v1  ;;  %v1751_v4 = vpop.f32.mrb[22].mxu0  ;;  %v626_v5 = vpack.c.bf16 %v599_v0, %v598_v63 }
 0x179   :  { %v1752_v7 = vpop.f32.mrb[23].mxu0 }
 0x17a   :  { %v504_v8 = vadd.f32 %v1750_v3, %v2630_v57  ;;  %v1753_v9 = vadd.f32 %v1752_v7, %v1751_v4  ;;  %2022 = vmatprep.mubr.bf16.mxu1 %v626_v5 }
 0x17c   :  { %v507_v10 = vadd.f32 %v1753_v9, %v2630_v57  ;;  %v600_v12 = vmax.f32 %v504_v8, 0.0 }
 0x17e   :  { %v601_v13 = vmax.f32 %v507_v10, 0.0  ;;  %v1754_v14 = vpop.f32.mrb[24].mxu0 }
 0x17f   :  { %v1755_v16 = vpop.f32.mrb[25].mxu0 }
 0x180   :  { %v1756_v26 = vadd.f32 %v1755_v16, %v1754_v14  ;;  %v1757_v27 = vpop.f32.mrb[26].mxu0  ;;  %v627_v28 = vpack.c.bf16 %v601_v13, %v600_v12 }
 0x181   :  { %v1758_v50 = vpop.f32.mrb[27].mxu0 }
 0x182   :  { %v512_v52 = vadd.f32 %v1756_v26, %v2630_v57  ;;  %v1759_v53 = vadd.f32 %v1758_v50, %v1757_v27  ;;  %2023 = vmatmul.mubr.bf16.gmra.mrb[24].mxu1 %v627_v28 }
 0x184   :  { %v515_v54 = vadd.f32 %v1759_v53, %v2630_v57  ;;  %v602_v56 = vmax.f32 %v512_v52, 0.0 }
 0x186   :  { %v603_v58 = vmax.f32 %v515_v54, 0.0  ;;  %v1760_v60 = vpop.f32.mrb[28].mxu0 }
 0x187   :  { %v1761_v61 = vpop.f32.mrb[29].mxu0 }
 0x188   :  { %v1762_v62 = vadd.f32 %v1761_v61, %v1760_v60  ;;  %v1763_v63 = vpop.f32.mrb[30].mxu0  ;;  %v628_v0 = vpack.c.bf16 %v603_v58, %v602_v56 }
 0x189   :  { %v1764_v1 = vpop.f32.mrb[31].mxu0 }
 0x18a   :  { %v520_v2 = vadd.f32 %v1762_v62, %v2630_v57  ;;  %v1765_v3 = vadd.f32 %v1764_v1, %v1763_v63  ;;  %2026 = vmatprep.mubr.bf16.mxu1 %v628_v0 }
 0x18c   :  { %v523_v4 = vadd.f32 %v1765_v3, %v2630_v57  ;;  %v604_v5 = vmax.f32 %v520_v2, 0.0 }
 0x18e   :  { %v605_v7 = vmax.f32 %v523_v4, 0.0  ;;  %v1766_v8 = vpop.f32.mrb[32].mxu0 }
 0x18f   :  { %v1767_v9 = vpop.f32.mrb[33].mxu0 }
 0x190   :  { %v1768_v10 = vadd.f32 %v1767_v9, %v1766_v8  ;;  %v1769_v12 = vpop.f32.mrb[34].mxu0  ;;  %v629_v13 = vpack.c.bf16 %v605_v7, %v604_v5 }
 0x191   :  { %v1770_v14 = vpop.f32.mrb[35].mxu0 }
 0x192   :  { %v528_v16 = vadd.f32 %v1768_v10, %v2630_v57  ;;  %v1771_v26 = vadd.f32 %v1770_v14, %v1769_v12  ;;  %2027 = vmatmul.mubr.bf16.gmra.mrb[28].mxu1 %v629_v13 }
 0x194   :  { %v531_v27 = vadd.f32 %v1771_v26, %v2630_v57  ;;  %v606_v28 = vmax.f32 %v528_v16, 0.0 }
 0x196   :  { %v607_v50 = vmax.f32 %v531_v27, 0.0  ;;  %v1772_v52 = vpop.f32.mrb[36].mxu0 }
 0x197   :  { %v1773_v53 = vpop.f32.mrb[37].mxu0 }
 0x198   :  { %v1774_v54 = vadd.f32 %v1773_v53, %v1772_v52  ;;  %v1775_v56 = vpop.f32.mrb[38].mxu0  ;;  %v630_v58 = vpack.c.bf16 %v607_v50, %v606_v28 }
 0x199   :  { %v1776_v60 = vpop.f32.mrb[39].mxu0 }
 0x19a   :  { %v536_v61 = vadd.f32 %v1774_v54, %v2630_v57  ;;  %v1777_v62 = vadd.f32 %v1776_v60, %v1775_v56  ;;  %2030 = vmatprep.mubr.bf16.mxu1 %v630_v58 }
 0x19c   :  { %v539_v63 = vadd.f32 %v1777_v62, %v2630_v57  ;;  %v608_v0 = vmax.f32 %v536_v61, 0.0 }
 0x19e   :  { %v609_v1 = vmax.f32 %v539_v63, 0.0  ;;  %v1778_v2 = vpop.f32.mrb[40].mxu0 }
 0x19f   :  { %v1779_v3 = vpop.f32.mrb[41].mxu0 }
 0x1a0   :  { %v1780_v4 = vadd.f32 %v1779_v3, %v1778_v2  ;;  %v1781_v5 = vpop.f32.mrb[42].mxu0  ;;  %v631_v7 = vpack.c.bf16 %v609_v1, %v608_v0 }
 0x1a1   :  { %v1782_v8 = vpop.f32.mrb[43].mxu0 }
 0x1a2   :  { %v544_v9 = vadd.f32 %v1780_v4, %v2630_v57  ;;  %v1783_v10 = vadd.f32 %v1782_v8, %v1781_v5  ;;  %2031 = vmatmul.mubr.bf16.gmra.mrb[32].mxu1 %v631_v7 }
 0x1a4   :  { %v547_v12 = vadd.f32 %v1783_v10, %v2630_v57  ;;  %v610_v13 = vmax.f32 %v544_v9, 0.0 }
 0x1a6   :  { %v611_v14 = vmax.f32 %v547_v12, 0.0  ;;  %v1784_v16 = vpop.f32.mrb[44].mxu0 }
 0x1a7   :  { %v1785_v26 = vpop.f32.mrb[45].mxu0 }
 0x1a8   :  { %v1786_v27 = vadd.f32 %v1785_v26, %v1784_v16  ;;  %v1787_v28 = vpop.f32.mrb[46].mxu0  ;;  %v632_v50 = vpack.c.bf16 %v611_v14, %v610_v13 }
 0x1a9   :  { %v1788_v52 = vpop.f32.mrb[47].mxu0 }
 0x1aa   :  { %v552_v53 = vadd.f32 %v1786_v27, %v2630_v57  ;;  %v1789_v54 = vadd.f32 %v1788_v52, %v1787_v28  ;;  %2034 = vmatprep.mubr.bf16.mxu1 %v632_v50 }
 0x1ac   :  { %v555_v56 = vadd.f32 %v1789_v54, %v2630_v57  ;;  %v612_v58 = vmax.f32 %v552_v53, 0.0 }
 0x1ae   :  { %v613_v60 = vmax.f32 %v555_v56, 0.0 }
 0x1b0   :  { %v633_v61 = vpack.c.bf16 %v613_v60, %v612_v58 }
 0x1b2   :  { %2035 = vmatmul.mubr.bf16.gmra.mrb[36].mxu1 %v633_v61 }
 0x1b3   :  { %2038 = vmatprep.mubr.bf16.mxu1 %v2636_v55 }
 0x1ba   :  { %2039 = vmatmul.mubr.bf16.gmra.mrb[40].mxu1 %v2642_v15 }
 0x1bb   :  { %2042 = vmatprep.mubr.bf16.mxu1 %v2648_v6 }
 0x1c2   :  { %2043 = vmatmul.mubr.bf16.gmra.mrb[44].mxu1 %v2654_v59 }
 0x1c3   :  { %918 = vmatprep.mubr.bf16.mxu1 %v2531_v11 }
 0x235   :  { %v2016_v62 = vpop.f32.mrb[16].mxu1 }
 0x236   :  { %v736_v63 = vpop.f32.mrb[17].mxu1 }
 0x237   :  { %v2017_v0 = vpop.f32.mrb[18].mxu1 }
 0x238   :  { %v864_v1 = vpack.c.bf16 %v2017_v0, %v2016_v62  ;;  %v739_v2 = vpop.f32.mrb[19].mxu1 }
 0x239   :  { %v863_v57 = vpack.c.bf16 %v739_v2, %v736_v63 }
 0x245   :  { %v2020_v3 = vpop.f32.mrb[20].mxu1 }
 0x246   :  { %v752_v4 = vpop.f32.mrb[21].mxu1 }
 0x247   :  { %v2021_v5 = vpop.f32.mrb[22].mxu1 }
 0x248   :  { %v866_v7 = vpack.c.bf16 %v2021_v5, %v2020_v3  ;;  %v755_v8 = vpop.f32.mrb[23].mxu1 }
 0x249   :  { %v865_v55 = vpack.c.bf16 %v755_v8, %v752_v4 }
 0x255   :  { %v2024_v9 = vpop.f32.mrb[24].mxu1 }
 0x256   :  { %v768_v15 = vpop.f32.mrb[25].mxu1 }
 0x257   :  { %v2025_v10 = vpop.f32.mrb[26].mxu1 }
 0x258   :  { %v868_v6 = vpack.c.bf16 %v2025_v10, %v2024_v9  ;;  %v771_v12 = vpop.f32.mrb[27].mxu1 }
 0x259   :  { %v867_v59 = vpack.c.bf16 %v771_v12, %v768_v15 }
 0x265   :  { %v2028_v13 = vpop.f32.mrb[28].mxu1 }
 0x266   :  { %v784_v11 = vpop.f32.mrb[29].mxu1 }
 0x267   :  { %v2029_v14 = vpop.f32.mrb[30].mxu1 }
 0x268   :  { %v870_v16 = vpack.c.bf16 %v2029_v14, %v2028_v13  ;;  %v787_v26 = vpop.f32.mrb[31].mxu1 }
 0x269   :  { %v869_v27 = vpack.c.bf16 %v787_v26, %v784_v11  ;;  %v2241_v11 = vld [vmem:[#allocation8 + $0x8] sm:$0xff]  }
 0x275   :  { %v2032_v28 = vpop.f32.mrb[32].mxu1 }
 0x276   :  { %v800_v50 = vpop.f32.mrb[33].mxu1 }
 0x277   :  { %v2033_v52 = vpop.f32.mrb[34].mxu1 }
 0x278   :  { %v872_v53 = vpack.c.bf16 %v2033_v52, %v2032_v28  ;;  %v803_v54 = vpop.f32.mrb[35].mxu1  ;;  %v2251_v28 = vld [vmem:[#allocation10 + $0x18] sm:$0xff]  }
 0x279   :  { %v871_v56 = vpack.c.bf16 %v803_v54, %v800_v50 }
 0x27b   :  { %1838 = vmatprep.subr.bf16.mxu1 %v871_v56 }
 0x27c   :  { %1839 = vmatpush3.bf16.msra.mxu1 %v863_v57 }
 0x27d   :  { %1840 = vmatprep.subr.bf16.mxu1 %v872_v53 }
 0x280   :  { %1841 = vmatpush3.bf16.msra.mxu1 %v864_v1 }
 0x285   :  { %v2036_v58 = vpop.f32.mrb[36].mxu1 }
 0x286   :  { %v816_v60 = vpop.f32.mrb[37].mxu1 }
 0x287   :  { %v2037_v61 = vpop.f32.mrb[38].mxu1 }
 0x288   :  { %v874_v62 = vpack.c.bf16 %v2037_v61, %v2036_v58  ;;  %v819_v63 = vpop.f32.mrb[39].mxu1  ;;  %v2252_v58 = vld [vmem:[#allocation10 + $0x20] sm:$0xff]  }
 0x289   :  { %v873_v0 = vpack.c.bf16 %v819_v63, %v816_v60 }
 0x28b   :  { %1842 = vmatprep.subr.bf16.mxu1 %v873_v0  ;;  %v2253_v0 = vld [vmem:[#allocation10 + $0x28] sm:$0xff]  }
 0x28c   :  { %1843 = vmatpush3.bf16.msra.mxu1 %v865_v55  ;;  %v2240_v55 = vld [vmem:[#allocation8] sm:$0xff]  }
 0x28d   :  { %v2040_v2 = vpop.f32.mrb[40].mxu1  ;;  %1844 = vmatprep.subr.bf16.mxu1 %v874_v62  ;;  %2046 = vmatprep.subr.bf16.mxu0 %v2240_v55 }
 0x28e   :  { %v832_v3 = vpop.f32.mrb[41].mxu1  ;;  %2047 = vmatpush3.bf16.msra.mxu0 %v2240_v55 }
 0x28f   :  { %v2041_v4 = vpop.f32.mrb[42].mxu1  ;;  %2048 = vmatprep.subr.bf16.mxu0 %v2241_v11 }
 0x290   :  { %v876_v5 = vpack.c.bf16 %v2041_v4, %v2040_v2  ;;  %v835_v8 = vpop.f32.mrb[43].mxu1  ;;  %1845 = vmatpush3.bf16.msra.mxu1 %v866_v7  ;;  %v2242_v7 = vld [vmem:[#allocation8 + $0x10] sm:$0xff]  }
 0x291   :  { %v875_v9 = vpack.c.bf16 %v835_v8, %v832_v3 }
 0x292   :  { %2049 = vmatpush3.bf16.msra.mxu0 %v2241_v11 }
 0x293   :  { %1846 = vmatprep.subr.bf16.mxu1 %v875_v9  ;;  %2050 = vmatprep.subr.bf16.mxu0 %v2242_v7 }
 0x294   :  { %1847 = vmatpush3.bf16.msra.mxu1 %v867_v59  ;;  %v2243_v59 = vld [vmem:[#allocation8 + $0x18] sm:$0xff]  }
 0x295   :  { %v2044_v57 = vpop.f32.mrb[44].mxu1  ;;  %1848 = vmatprep.subr.bf16.mxu1 %v876_v5 }
 0x296   :  { %v848_v1 = vpop.f32.mrb[45].mxu1  ;;  %2051 = vmatpush3.bf16.msra.mxu0 %v2242_v7 }
 0x297   :  { %v2045_v15 = vpop.f32.mrb[46].mxu1  ;;  %2052 = vmatprep.subr.bf16.mxu0 %v2243_v59 }
 0x298   :  { %v878_v10 = vpack.c.bf16 %v2045_v15, %v2044_v57  ;;  %v851_v12 = vpop.f32.mrb[47].mxu1  ;;  %1849 = vmatpush3.bf16.msra.mxu1 %v868_v6  ;;  %v2244_v6 = vld [vmem:[#allocation8 + $0x20] sm:$0xff]  }
 0x299   :  { %v877_v13 = vpack.c.bf16 %v851_v12, %v848_v1 }
 0x29a   :  { %2053 = vmatpush3.bf16.msra.mxu0 %v2243_v59 }
 0x29b   :  { %1850 = vmatprep.subr.bf16.mxu1 %v877_v13  ;;  %2054 = vmatprep.subr.bf16.mxu0 %v2244_v6 }
 0x29c   :  { %1851 = vmatpush3.bf16.msra.mxu1 %v869_v27 }
 0x29d   :  { %1852 = vmatprep.subr.bf16.mxu1 %v878_v10 }
 0x29e   :  { %2055 = vmatpush3.bf16.msra.mxu0 %v2244_v6 }
 0x2a0   :  { %1853 = vmatpush3.bf16.msra.mxu1 %v870_v16 }
 0x2a3   :  { %919 = vmatmul.mubr.bf16.vlgmr.msra.gmra.mrb[48].mxu1 %v2534_v17  ;;  %v2245_v17 = vld [vmem:[#allocation8 + $0x28] sm:$0xff]  }
 0x2a4   :  { %926 = vmatprep.mubr.bf16.mxu1 %v2536_v18  ;;  %2056 = vmatprep.subr.bf16.mxu0 %v2245_v17  ;;  %v2246_v18 = vld [vmem:[#allocation8 + $0x30] sm:$0xff]  }
 0x2a5   :  { %2057 = vmatpush3.bf16.msra.mxu0 %v2245_v17 }
 0x2a6   :  { %2058 = vmatprep.subr.bf16.mxu0 %v2246_v18 }
 0x2a9   :  { %2059 = vmatpush3.bf16.msra.mxu0 %v2246_v18 }
 0x2ab   :  { %927 = vmatmul.mubr.bf16.gmra.mrb[52].mxu1 %v2548_v22  ;;  %v2247_v22 = vld [vmem:[#allocation8 + $0x38] sm:$0xff]  }
 0x2ac   :  { %934 = vmatprep.mubr.bf16.mxu1 %v2551_v23  ;;  %2060 = vmatprep.subr.bf16.mxu0 %v2247_v22 }
 0x2ad   :  { %2061 = vmatpush3.bf16.msra.mxu0 %v2247_v22 }
 0x2b3   :  { %935 = vmatmul.mubr.bf16.gmra.mrb[56].mxu1 %v2560_v29 }
 0x2b4   :  { %942 = vmatprep.mubr.bf16.mxu1 %v2563_v30 }
 0x2bb   :  { %943 = vmatmul.mubr.bf16.gmra.mrb[60].mxu1 %v2573_v33  ;;  %v2248_v33 = vld [vmem:[#allocation10] sm:$0xff]  }
 0x2bc   :  { %950 = vmatprep.mubr.bf16.mxu1 %v2575_v34  ;;  %2094 = vmatprep.subr.bf16.mxu0 %v2248_v33 }
 0x2c3   :  { %951 = vmatmul.mubr.bf16.gmra.mrb[64].mxu1 %v2582_v36 }
 0x2c4   :  { %958 = vmatprep.mubr.bf16.mxu1 %v2584_v37 }
 0x2cb   :  { %959 = vmatmul.mubr.bf16.gmra.mrb[68].mxu1 %v2588_v38 }
 0x2cc   :  { %966 = vmatprep.mubr.bf16.mxu1 %v2590_v39 }
 0x2d3   :  { %967 = vmatmul.mubr.bf16.gmra.mrb[72].mxu1 %v2594_v40 }
 0x2d4   :  { %974 = vmatprep.mubr.bf16.mxu1 %v2596_v41 }
 0x2db   :  { %975 = vmatmul.mubr.bf16.gmra.mrb[76].mxu1 %v2600_v42 }
 0x2dc   :  { %982 = vmatprep.mubr.bf16.mxu1 %v2602_v43 }
 0x2e3   :  { %983 = vmatmul.mubr.bf16.gmra.mrb[80].mxu1 %v2606_v44  ;;  %v2249_v44 = vld [vmem:[#allocation10 + $0x8] sm:$0xff]  }
 0x2e4   :  { %990 = vmatprep.mubr.bf16.mxu1 %v2608_v45 }
 0x2eb   :  { %991 = vmatmul.mubr.bf16.gmra.mrb[84].mxu1 %v2612_v46 }
 0x2ec   :  { %998 = vmatprep.mubr.bf16.mxu1 %v2614_v47 }
 0x2f3   :  { %999 = vmatmul.mubr.bf16.gmra.mrb[88].mxu1 %v2618_v48 }
 0x2f4   :  { %1006 = vmatprep.mubr.bf16.mxu1 %v2620_v49 }
 0x2fb   :  { %1007 = vmatmul.mubr.bf16.gmra.mrb[92].mxu1 %v2624_v51  ;;  %v2250_v51 = vld [vmem:[#allocation10 + $0x10] sm:$0xff]  }
 0x2fc   :  { %1014 = vmatprep.mubr.bf16.mxu1 %v2540_v20 }
 0x303   :  { %1015 = vmatmul.mubr.bf16.gmra.mrb[96].mxu1 %v2538_v19  ;;  %v2711_v19 = vld [vmem:[%s2838_s4] ss:$0 sm:$0xff] }
 0x304   :  { %1022 = vmatprep.mubr.bf16.mxu1 %v2543_v21 }
 0x30b   :  { %1023 = vmatmul.mubr.bf16.gmra.mrb[100].mxu1 %v2553_v24 }
 0x30c   :  { %1030 = vmatprep.mubr.bf16.mxu1 %v2555_v25 }
 0x313   :  { %1031 = vmatmul.mubr.bf16.gmra.mrb[104].mxu1 %v2565_v31 }
 0x314   :  { %1038 = vmatprep.mubr.bf16.mxu1 %v2567_v32 }
 0x31b   :  { %1039 = vmatmul.mubr.bf16.gmra.mrb[108].mxu1 %v2577_v35 }
 0x376   :  { %v1854_v20 = vpop.f32.mrb[48].mxu1 }
 0x377   :  { %v1855_v23 = vpop.f32.mrb[49].mxu1 }
 0x378   :  { %v1856_v29 = vadd.f32 %v1855_v23, %v1854_v20  ;;  %v1857_v30 = vpop.f32.mrb[50].mxu1 }
 0x379   :  { %v1858_v21 = vpop.f32.mrb[51].mxu1 }
 0x37a   :  { %v1859_v24 = vadd.f32 %v1858_v21, %v1857_v30  ;;  %v921_v25 = vadd.f32 %v1856_v29, %v2711_v19 }
 0x37c   :  { %v924_v31 = vadd.f32 %v1859_v24, %v2711_v19 }
 0x37e   :  { %v1860_v32 = vpop.f32.mrb[52].mxu1  ;;  %v1047_v34 = vpack.c.bf16 %v924_v31, %v921_v25 }
 0x37f   :  { %v1861_v35 = vpop.f32.mrb[53].mxu1 }
 0x380   :  { %v1862_v36 = vadd.f32 %v1861_v35, %v1860_v32  ;;  %v1863_v37 = vpop.f32.mrb[54].mxu1  ;;  %2062 = vmatprep.mubr.bf16.mxu0 %v1047_v34 }
 0x381   :  { %v1864_v38 = vpop.f32.mrb[55].mxu1 }
 0x382   :  { %v1865_v39 = vadd.f32 %v1864_v38, %v1863_v37  ;;  %v929_v40 = vadd.f32 %v1862_v36, %v2711_v19 }
 0x384   :  { %v932_v41 = vadd.f32 %v1865_v39, %v2711_v19 }
 0x386   :  { %v1048_v42 = vpack.c.bf16 %v932_v41, %v929_v40  ;;  %v1866_v43 = vpop.f32.mrb[56].mxu1 }
 0x387   :  { %v1867_v45 = vpop.f32.mrb[57].mxu1 }
 0x388   :  { %2063 = vmatmul.mubr.bf16.vlgmr.msra.gmra.mrb[48].mxu0 %v1048_v42  ;;  %v1868_v46 = vadd.f32 %v1867_v45, %v1866_v43  ;;  %v1869_v47 = vpop.f32.mrb[58].mxu1 }
 0x389   :  { %v1870_v48 = vpop.f32.mrb[59].mxu1  ;;  %2095 = vmatpush3.bf16.msra.mxu0 %v2248_v33 }
 0x38a   :  { %v1871_v49 = vadd.f32 %v1870_v48, %v1869_v47  ;;  %2096 = vmatprep.subr.bf16.mxu0 %v2249_v44  ;;  %v937_v14 = vadd.f32 %v1868_v46, %v2711_v19 }
 0x38c   :  { %v940_v16 = vadd.f32 %v1871_v49, %v2711_v19 }
 0x38d   :  { %2097 = vmatpush3.bf16.msra.mxu0 %v2249_v44 }
 0x38e   :  { %v1872_v26 = vpop.f32.mrb[60].mxu1  ;;  %v1049_v27 = vpack.c.bf16 %v940_v16, %v937_v14  ;;  %2098 = vmatprep.subr.bf16.mxu0 %v2250_v51 }
 0x38f   :  { %v1873_v50 = vpop.f32.mrb[61].mxu1 }
 0x390   :  { %v1874_v52 = vadd.f32 %v1873_v50, %v1872_v26  ;;  %v1875_v53 = vpop.f32.mrb[62].mxu1  ;;  %2066 = vmatprep.mubr.bf16.mxu0 %v1049_v27 }
 0x391   :  { %v1876_v54 = vpop.f32.mrb[63].mxu1  ;;  %2099 = vmatpush3.bf16.msra.mxu0 %v2250_v51 }
 0x392   :  { %v1877_v56 = vadd.f32 %v1876_v54, %v1875_v53  ;;  %2100 = vmatprep.subr.bf16.mxu0 %v2251_v28  ;;  %v945_v60 = vadd.f32 %v1874_v52, %v2711_v19 }
 0x394   :  { %v948_v61 = vadd.f32 %v1877_v56, %v2711_v19 }
 0x395   :  { %2101 = vmatpush3.bf16.msra.mxu0 %v2251_v28 }
 0x396   :  { %v1050_v62 = vpack.c.bf16 %v948_v61, %v945_v60  ;;  %v1878_v63 = vpop.f32.mrb[64].mxu1  ;;  %2102 = vmatprep.subr.bf16.mxu0 %v2252_v58 }
 0x397   :  { %v1879_v2 = vpop.f32.mrb[65].mxu1 }
 0x398   :  { %2067 = vmatmul.mubr.bf16.gmra.mrb[52].mxu0 %v1050_v62  ;;  %v1880_v3 = vadd.f32 %v1879_v2, %v1878_v63  ;;  %v1881_v4 = vpop.f32.mrb[66].mxu1 }
 0x399   :  { %v1882_v5 = vpop.f32.mrb[67].mxu1  ;;  %2103 = vmatpush3.bf16.msra.mxu0 %v2252_v58 }
 0x39a   :  { %v1883_v8 = vadd.f32 %v1882_v5, %v1881_v4  ;;  %2104 = vmatprep.subr.bf16.mxu0 %v2253_v0  ;;  %v953_v9 = vadd.f32 %v1880_v3, %v2711_v19 }
 0x39c   :  { %v956_v57 = vadd.f32 %v1883_v8, %v2711_v19 }
 0x39d   :  { %2105 = vmatpush3.bf16.msra.mxu0 %v2253_v0 }
 0x39e   :  { %v1884_v1 = vpop.f32.mrb[68].mxu1  ;;  %v1051_v15 = vpack.c.bf16 %v956_v57, %v953_v9 }
 0x39f   :  { %v1885_v10 = vpop.f32.mrb[69].mxu1 }
 0x3a0   :  { %v1886_v12 = vadd.f32 %v1885_v10, %v1884_v1  ;;  %v1887_v13 = vpop.f32.mrb[70].mxu1  ;;  %2070 = vmatprep.mubr.bf16.mxu0 %v1051_v15 }
 0x3a1   :  { %v1888_v55 = vpop.f32.mrb[71].mxu1 }
 0x3a2   :  { %v1889_v11 = vadd.f32 %v1888_v55, %v1887_v13  ;;  %v961_v7 = vadd.f32 %v1886_v12, %v2711_v19 }
 0x3a4   :  { %v964_v59 = vadd.f32 %v1889_v11, %v2711_v19 }
 0x3a6   :  { %v1052_v6 = vpack.c.bf16 %v964_v59, %v961_v7  ;;  %v1890_v17 = vpop.f32.mrb[72].mxu1 }
 0x3a7   :  { %v1891_v18 = vpop.f32.mrb[73].mxu1 }
 0x3a8   :  { %2071 = vmatmul.mubr.bf16.gmra.mrb[56].mxu0 %v1052_v6  ;;  %v1892_v22 = vadd.f32 %v1891_v18, %v1890_v17  ;;  %v1893_v20 = vpop.f32.mrb[74].mxu1  ;;  %v2254_v6 = vld [vmem:[#allocation10 + $0x30] sm:$0xff]  }
 0x3a9   :  { %v1894_v23 = vpop.f32.mrb[75].mxu1  ;;  %2106 = vmatprep.subr.bf16.mxu0 %v2254_v6 }
 0x3aa   :  { %v1895_v29 = vadd.f32 %v1894_v23, %v1893_v20  ;;  %v969_v30 = vadd.f32 %v1892_v22, %v2711_v19  ;;  %2107 = vmatpush3.bf16.msra.mxu0 %v2254_v6 }
 0x3ac   :  { %v972_v33 = vadd.f32 %v1895_v29, %v2711_v19  ;;  %v2255_v29 = vld [vmem:[#allocation10 + $0x38] sm:$0xff]  }
 0x3ad   :  { %2108 = vmatprep.subr.bf16.mxu0 %v2255_v29 }
 0x3ae   :  { %v1896_v21 = vpop.f32.mrb[76].mxu1  ;;  %v1053_v24 = vpack.c.bf16 %v972_v33, %v969_v30  ;;  %2109 = vmatpush3.bf16.msra.mxu0 %v2255_v29 }
 0x3af   :  { %v1897_v25 = vpop.f32.mrb[77].mxu1 }
 0x3b0   :  { %v1898_v31 = vadd.f32 %v1897_v25, %v1896_v21  ;;  %v1899_v32 = vpop.f32.mrb[78].mxu1  ;;  %2074 = vmatprep.mubr.bf16.mxu0 %v1053_v24 }
 0x3b1   :  { %v1900_v34 = vpop.f32.mrb[79].mxu1 }
 0x3b2   :  { %v1901_v35 = vadd.f32 %v1900_v34, %v1899_v32  ;;  %v977_v36 = vadd.f32 %v1898_v31, %v2711_v19 }
 0x3b4   :  { %v980_v37 = vadd.f32 %v1901_v35, %v2711_v19 }
 0x3b6   :  { %v1054_v38 = vpack.c.bf16 %v980_v37, %v977_v36  ;;  %v1902_v39 = vpop.f32.mrb[80].mxu1 }
 0x3b7   :  { %v1903_v40 = vpop.f32.mrb[81].mxu1 }
 0x3b8   :  { %2075 = vmatmul.mubr.bf16.gmra.mrb[60].mxu0 %v1054_v38  ;;  %v1904_v41 = vadd.f32 %v1903_v40, %v1902_v39  ;;  %v1905_v42 = vpop.f32.mrb[82].mxu1 }
 0x3b9   :  { %v1906_v43 = vpop.f32.mrb[83].mxu1 }
 0x3ba   :  { %v1907_v44 = vadd.f32 %v1906_v43, %v1905_v42  ;;  %v985_v45 = vadd.f32 %v1904_v41, %v2711_v19 }
 0x3bc   :  { %v988_v46 = vadd.f32 %v1907_v44, %v2711_v19 }
 0x3be   :  { %v1908_v47 = vpop.f32.mrb[84].mxu1  ;;  %v1055_v48 = vpack.c.bf16 %v988_v46, %v985_v45 }
 0x3bf   :  { %v1909_v49 = vpop.f32.mrb[85].mxu1 }
 0x3c0   :  { %v1910_v51 = vadd.f32 %v1909_v49, %v1908_v47  ;;  %v1911_v14 = vpop.f32.mrb[86].mxu1  ;;  %2078 = vmatprep.mubr.bf16.mxu0 %v1055_v48 }
 0x3c1   :  { %v1912_v16 = vpop.f32.mrb[87].mxu1 }
 0x3c2   :  { %v1913_v26 = vadd.f32 %v1912_v16, %v1911_v14  ;;  %v993_v27 = vadd.f32 %v1910_v51, %v2711_v19  ;;  %v2748_v51 = vld [vmem:[%s2840_s6] ss:$0 sm:$0xff] }
 0x3c4   :  { %v996_v28 = vadd.f32 %v1913_v26, %v2711_v19 }
 0x3c6   :  { %v1056_v50 = vpack.c.bf16 %v996_v28, %v993_v27  ;;  %v1914_v52 = vpop.f32.mrb[88].mxu1 }
 0x3c7   :  { %v1915_v53 = vpop.f32.mrb[89].mxu1 }
 0x3c8   :  { %2079 = vmatmul.mubr.bf16.gmra.mrb[64].mxu0 %v1056_v50  ;;  %v1916_v54 = vadd.f32 %v1915_v53, %v1914_v52  ;;  %v1917_v56 = vpop.f32.mrb[90].mxu1 }
 0x3c9   :  { %v1918_v58 = vpop.f32.mrb[91].mxu1 }
 0x3ca   :  { %v1919_v60 = vadd.f32 %v1918_v58, %v1917_v56  ;;  %v1001_v61 = vadd.f32 %v1916_v54, %v2711_v19 }
 0x3cc   :  { %v1004_v62 = vadd.f32 %v1919_v60, %v2711_v19 }
 0x3ce   :  { %v1920_v63 = vpop.f32.mrb[92].mxu1  ;;  %v1057_v0 = vpack.c.bf16 %v1004_v62, %v1001_v61 }
 0x3cf   :  { %v1921_v2 = vpop.f32.mrb[93].mxu1 }
 0x3d0   :  { %v1922_v3 = vadd.f32 %v1921_v2, %v1920_v63  ;;  %v1923_v4 = vpop.f32.mrb[94].mxu1  ;;  %2082 = vmatprep.mubr.bf16.mxu0 %v1057_v0 }
 0x3d1   :  { %v1924_v5 = vpop.f32.mrb[95].mxu1 }
 0x3d2   :  { %v1925_v8 = vadd.f32 %v1924_v5, %v1923_v4  ;;  %v1009_v9 = vadd.f32 %v1922_v3, %v2711_v19 }
 0x3d4   :  { %v1012_v57 = vadd.f32 %v1925_v8, %v2711_v19 }
 0x3d6   :  { %v1058_v1 = vpack.c.bf16 %v1012_v57, %v1009_v9  ;;  %v1926_v15 = vpop.f32.mrb[96].mxu1 }
 0x3d7   :  { %v1927_v10 = vpop.f32.mrb[97].mxu1 }
 0x3d8   :  { %2083 = vmatmul.mubr.bf16.gmra.mrb[68].mxu0 %v1058_v1  ;;  %v1928_v12 = vadd.f32 %v1927_v10, %v1926_v15  ;;  %v1929_v13 = vpop.f32.mrb[98].mxu1 }
 0x3d9   :  { %v1930_v55 = vpop.f32.mrb[99].mxu1 }
 0x3da   :  { %v1931_v11 = vadd.f32 %v1930_v55, %v1929_v13  ;;  %v1017_v7 = vadd.f32 %v1928_v12, %v2711_v19 }
 0x3dc   :  { %v1020_v59 = vadd.f32 %v1931_v11, %v2711_v19 }
 0x3de   :  { %v1932_v17 = vpop.f32.mrb[100].mxu1  ;;  %v1059_v18 = vpack.c.bf16 %v1020_v59, %v1017_v7 }
 0x3df   :  { %v1933_v22 = vpop.f32.mrb[101].mxu1 }
 0x3e0   :  { %v1934_v20 = vadd.f32 %v1933_v22, %v1932_v17  ;;  %v1935_v23 = vpop.f32.mrb[102].mxu1  ;;  %2086 = vmatprep.mubr.bf16.mxu0 %v1059_v18 }
 0x3e1   :  { %v1936_v30 = vpop.f32.mrb[103].mxu1 }
 0x3e2   :  { %v1937_v33 = vadd.f32 %v1936_v30, %v1935_v23  ;;  %v1025_v21 = vadd.f32 %v1934_v20, %v2711_v19 }
 0x3e4   :  { %v1028_v24 = vadd.f32 %v1937_v33, %v2711_v19 }
 0x3e6   :  { %v1060_v25 = vpack.c.bf16 %v1028_v24, %v1025_v21  ;;  %v1938_v31 = vpop.f32.mrb[104].mxu1 }
 0x3e7   :  { %v1939_v32 = vpop.f32.mrb[105].mxu1 }
 0x3e8   :  { %2087 = vmatmul.mubr.bf16.gmra.mrb[72].mxu0 %v1060_v25  ;;  %v1940_v34 = vadd.f32 %v1939_v32, %v1938_v31  ;;  %v1941_v35 = vpop.f32.mrb[106].mxu1 }
 0x3e9   :  { %v1942_v36 = vpop.f32.mrb[107].mxu1 }
 0x3ea   :  { %v1943_v37 = vadd.f32 %v1942_v36, %v1941_v35  ;;  %v1033_v38 = vadd.f32 %v1940_v34, %v2711_v19 }
 0x3ec   :  { %v1036_v39 = vadd.f32 %v1943_v37, %v2711_v19 }
 0x3ee   :  { %v1944_v40 = vpop.f32.mrb[108].mxu1  ;;  %v1061_v41 = vpack.c.bf16 %v1036_v39, %v1033_v38 }
 0x3ef   :  { %v1945_v42 = vpop.f32.mrb[109].mxu1 }
 0x3f0   :  { %v1946_v43 = vadd.f32 %v1945_v42, %v1944_v40  ;;  %v1947_v44 = vpop.f32.mrb[110].mxu1  ;;  %2090 = vmatprep.mubr.bf16.mxu0 %v1061_v41 }
 0x3f1   :  { %v1948_v45 = vpop.f32.mrb[111].mxu1 }
 0x3f2   :  { %v1949_v46 = vadd.f32 %v1948_v45, %v1947_v44  ;;  %v1041_v47 = vadd.f32 %v1946_v43, %v2711_v19 }
 0x3f4   :  { %v1044_v48 = vadd.f32 %v1949_v46, %v2711_v19 }
 0x3f6   :  { %v1062_v49 = vpack.c.bf16 %v1044_v48, %v1041_v47 }
 0x3f8   :  { %2091 = vmatmul.mubr.bf16.gmra.mrb[76].mxu0 %v1062_v49 }
 0x45b   :  { %v2064_v14 = vpop.f32.mrb[48].mxu0 }
 0x45c   :  { %v1177_v16 = vadd.f32 %v2064_v14, %v2748_v51  ;;  %v1168_v26 = vpop.f32.mrb[49].mxu0 }
 0x45d   :  { %v1169_v27 = vadd.f32 %v2748_v51, %v1168_v26  ;;  %v2065_v28 = vpop.f32.mrb[50].mxu0 }
 0x45e   :  { %v1180_v50 = vadd.f32 %v2065_v28, %v2748_v51  ;;  %v1171_v52 = vpop.f32.mrb[51].mxu0  ;;  %v1297_v19 = vmax.f32 %v1177_v16, 0.0 }
 0x45f   :  { %v1172_v53 = vadd.f32 %v2748_v51, %v1171_v52  ;;  %v1295_v56 = vmax.f32 %v1169_v27, 0.0 }
 0x460   :  { %v1298_v54 = vmax.f32 %v1180_v50, 0.0 }
 0x461   :  { %v1296_v58 = vmax.f32 %v1172_v53, 0.0 }
 0x462   :  { %v1328_v60 = vpack.c.bf16 %v1298_v54, %v1297_v19 }
 0x463   :  { %v1327_v61 = vpack.c.bf16 %v1296_v58, %v1295_v56 }
 0x465   :  { %2110 = vmatprep.mubr.bf16.mxu0 %v1327_v61 }
 0x466   :  { %2111 = vmatmul.mubr.bf16.vlgmr.msra.gmra.mrb[80].mxu0 %v1328_v60 }
 0x46b   :  { %v2068_v62 = vpop.f32.mrb[52].mxu0 }
 0x46c   :  { %v1193_v63 = vadd.f32 %v2068_v62, %v2748_v51  ;;  %v1184_v0 = vpop.f32.mrb[53].mxu0 }
 0x46d   :  { %v1185_v2 = vadd.f32 %v2748_v51, %v1184_v0  ;;  %v2069_v3 = vpop.f32.mrb[54].mxu0 }
 0x46e   :  { %v1196_v4 = vadd.f32 %v2069_v3, %v2748_v51  ;;  %v1187_v5 = vpop.f32.mrb[55].mxu0  ;;  %v1301_v9 = vmax.f32 %v1193_v63, 0.0 }
 0x46f   :  { %v1188_v8 = vadd.f32 %v2748_v51, %v1187_v5  ;;  %v1299_v1 = vmax.f32 %v1185_v2, 0.0 }
 0x470   :  { %v1302_v57 = vmax.f32 %v1196_v4, 0.0 }
 0x471   :  { %v1300_v15 = vmax.f32 %v1188_v8, 0.0 }
 0x472   :  { %v1330_v10 = vpack.c.bf16 %v1302_v57, %v1301_v9 }
 0x473   :  { %v1329_v12 = vpack.c.bf16 %v1300_v15, %v1299_v1 }
 0x475   :  { %2114 = vmatprep.mubr.bf16.mxu0 %v1329_v12 }
 0x476   :  { %2115 = vmatmul.mubr.bf16.gmra.mrb[84].mxu0 %v1330_v10 }
 0x47b   :  { %v2072_v13 = vpop.f32.mrb[56].mxu0 }
 0x47c   :  { %v1209_v55 = vadd.f32 %v2072_v13, %v2748_v51  ;;  %v1200_v11 = vpop.f32.mrb[57].mxu0 }
 0x47d   :  { %v1201_v7 = vadd.f32 %v2748_v51, %v1200_v11  ;;  %v2073_v59 = vpop.f32.mrb[58].mxu0 }
 0x47e   :  { %v1212_v6 = vadd.f32 %v2073_v59, %v2748_v51  ;;  %v1203_v17 = vpop.f32.mrb[59].mxu0  ;;  %v1305_v22 = vmax.f32 %v1209_v55, 0.0 }
 0x47f   :  { %v1204_v18 = vadd.f32 %v2748_v51, %v1203_v17  ;;  %v1303_v23 = vmax.f32 %v1201_v7, 0.0 }
 0x480   :  { %v1306_v20 = vmax.f32 %v1212_v6, 0.0 }
 0x481   :  { %v1304_v29 = vmax.f32 %v1204_v18, 0.0 }
 0x482   :  { %v1332_v30 = vpack.c.bf16 %v1306_v20, %v1305_v22 }
 0x483   :  { %v1331_v33 = vpack.c.bf16 %v1304_v29, %v1303_v23 }
 0x485   :  { %2118 = vmatprep.mubr.bf16.mxu0 %v1331_v33 }
 0x486   :  { %2119 = vmatmul.mubr.bf16.gmra.mrb[88].mxu0 %v1332_v30 }
 0x48b   :  { %v2076_v21 = vpop.f32.mrb[60].mxu0 }
 0x48c   :  { %v1225_v24 = vadd.f32 %v2076_v21, %v2748_v51  ;;  %v1216_v25 = vpop.f32.mrb[61].mxu0 }
 0x48d   :  { %v1217_v31 = vadd.f32 %v2748_v51, %v1216_v25  ;;  %v2077_v32 = vpop.f32.mrb[62].mxu0 }
 0x48e   :  { %v1228_v34 = vadd.f32 %v2077_v32, %v2748_v51  ;;  %v1219_v35 = vpop.f32.mrb[63].mxu0  ;;  %v1309_v37 = vmax.f32 %v1225_v24, 0.0 }
 0x48f   :  { %v1220_v36 = vadd.f32 %v2748_v51, %v1219_v35  ;;  %v1307_v39 = vmax.f32 %v1217_v31, 0.0 }
 0x490   :  { %v1310_v38 = vmax.f32 %v1228_v34, 0.0 }
 0x491   :  { %v1308_v40 = vmax.f32 %v1220_v36, 0.0  ;;  %v2785_v36 = vld [vmem:[%s2842_s8] ss:$0 sm:$0xff]  ;;  %s2405_s8 = smov [#allocation11]  }
 0x492   :  { %v1334_v41 = vpack.c.bf16 %v1310_v38, %v1309_v37  ;;  %s1612_s1 = sshll.u32 %s2405_s8, 4  ;;  %s1613_s1 = int_to_ptr.vmem [resolvable:$true] %s1612_s1 }
 0x493   :  { %v1333_v42 = vpack.c.bf16 %v1308_v40, %v1307_v39  ;;  %s2366_s10 = scalar_lea.vmem %s1613_s1, 4096  ;;  %p2371_p13 = scmp.lt.s32.totalorder %s1613_s1, %s1613_s1 }
 0x494   :  { %p2367_p12 = scmp.ne.s32.totalorder %s1613_s1, %s2366_s10  ;;  %p2372_p0 = scmp.lt.s32.totalorder %s2366_s10, %s2366_s10 }
 0x495   :  { %2122 = vmatprep.mubr.bf16.mxu0 %v1333_v42 }
 0x496   :  { %2123 = vmatmul.mubr.bf16.gmra.mrb[92].mxu0 %v1334_v41  ;;  %p2373_p1 = por %p2372_p0, %p2371_p13 }
 0x498   :  { %p2374_p2 = pnand %p2373_p1, %p2367_p12 }
 0x49b   :  { %v2080_v43 = vpop.f32.mrb[64].mxu0 }
 0x49c   :  { %v1241_v44 = vadd.f32 %v2080_v43, %v2748_v51  ;;  %v1232_v45 = vpop.f32.mrb[65].mxu0 }
 0x49d   :  { %v1233_v46 = vadd.f32 %v2748_v51, %v1232_v45  ;;  %v2081_v47 = vpop.f32.mrb[66].mxu0 }
 0x49e   :  { %v1244_v48 = vadd.f32 %v2081_v47, %v2748_v51  ;;  %v1235_v49 = vpop.f32.mrb[67].mxu0  ;;  %v1313_v16 = vmax.f32 %v1241_v44, 0.0 }
 0x49f   :  { %v1236_v14 = vadd.f32 %v2748_v51, %v1235_v49  ;;  %v1311_v27 = vmax.f32 %v1233_v46, 0.0 }
 0x4a0   :  { %v1314_v26 = vmax.f32 %v1244_v48, 0.0 }
 0x4a1   :  { %v1312_v28 = vmax.f32 %v1236_v14, 0.0 }
 0x4a2   :  { %v1336_v50 = vpack.c.bf16 %v1314_v26, %v1313_v16 }
 0x4a3   :  { %v1335_v52 = vpack.c.bf16 %v1312_v28, %v1311_v27 }
 0x4a5   :  { %2126 = vmatprep.mubr.bf16.mxu0 %v1335_v52 }
 0x4a6   :  { %2127 = vmatmul.mubr.bf16.gmra.mrb[96].mxu0 %v1336_v50 }
 0x4ab   :  { %v2084_v53 = vpop.f32.mrb[68].mxu0 }
 0x4ac   :  { %v1257_v19 = vadd.f32 %v2084_v53, %v2748_v51  ;;  %v1248_v54 = vpop.f32.mrb[69].mxu0 }
 0x4ad   :  { %v1249_v56 = vadd.f32 %v2748_v51, %v1248_v54  ;;  %v2085_v58 = vpop.f32.mrb[70].mxu0 }
 0x4ae   :  { %v1260_v60 = vadd.f32 %v2085_v58, %v2748_v51  ;;  %v1251_v61 = vpop.f32.mrb[71].mxu0  ;;  %v1317_v63 = vmax.f32 %v1257_v19, 0.0 }
 0x4af   :  { %v1252_v62 = vadd.f32 %v2748_v51, %v1251_v61  ;;  %v1315_v2 = vmax.f32 %v1249_v56, 0.0 }
 0x4b0   :  { %v1318_v0 = vmax.f32 %v1260_v60, 0.0 }
 0x4b1   :  { %v1316_v3 = vmax.f32 %v1252_v62, 0.0 }
 0x4b2   :  { %v1338_v4 = vpack.c.bf16 %v1318_v0, %v1317_v63 }
 0x4b3   :  { %v1337_v5 = vpack.c.bf16 %v1316_v3, %v1315_v2 }
 0x4b5   :  { %2130 = vmatprep.mubr.bf16.mxu0 %v1337_v5 }
 0x4b6   :  { %2131 = vmatmul.mubr.bf16.gmra.mrb[100].mxu0 %v1338_v4 }
 0x4bb   :  { %v2088_v8 = vpop.f32.mrb[72].mxu0 }
 0x4bc   :  { %v1273_v9 = vadd.f32 %v2088_v8, %v2748_v51  ;;  %v1264_v57 = vpop.f32.mrb[73].mxu0 }
 0x4bd   :  { %v1265_v1 = vadd.f32 %v2748_v51, %v1264_v57  ;;  %v2089_v15 = vpop.f32.mrb[74].mxu0 }
 0x4be   :  { %v1276_v10 = vadd.f32 %v2089_v15, %v2748_v51  ;;  %v1267_v12 = vpop.f32.mrb[75].mxu0  ;;  %v1321_v55 = vmax.f32 %v1273_v9, 0.0 }
 0x4bf   :  { %v1268_v13 = vadd.f32 %v2748_v51, %v1267_v12  ;;  %v1319_v7 = vmax.f32 %v1265_v1, 0.0 }
 0x4c0   :  { %v1322_v11 = vmax.f32 %v1276_v10, 0.0 }
 0x4c1   :  { %v1320_v59 = vmax.f32 %v1268_v13, 0.0 }
 0x4c2   :  { %v1340_v6 = vpack.c.bf16 %v1322_v11, %v1321_v55 }
 0x4c3   :  { %v1339_v17 = vpack.c.bf16 %v1320_v59, %v1319_v7 }
 0x4c5   :  { %2134 = vmatprep.mubr.bf16.mxu0 %v1339_v17 }
 0x4c6   :  { %2135 = vmatmul.mubr.bf16.gmra.mrb[104].mxu0 %v1340_v6 }
 0x4cb   :  { %v2092_v18 = vpop.f32.mrb[76].mxu0 }
 0x4cc   :  { %v1289_v22 = vadd.f32 %v2092_v18, %v2748_v51  ;;  %v1280_v20 = vpop.f32.mrb[77].mxu0 }
 0x4cd   :  { %v1281_v23 = vadd.f32 %v2748_v51, %v1280_v20  ;;  %v2093_v29 = vpop.f32.mrb[78].mxu0 }
 0x4ce   :  { %v1292_v30 = vadd.f32 %v2093_v29, %v2748_v51  ;;  %v1283_v33 = vpop.f32.mrb[79].mxu0  ;;  %v1325_v24 = vmax.f32 %v1289_v22, 0.0 }
 0x4cf   :  { %v1284_v21 = vadd.f32 %v2748_v51, %v1283_v33  ;;  %v1323_v31 = vmax.f32 %v1281_v23, 0.0 }
 0x4d0   :  { %v1326_v25 = vmax.f32 %v1292_v30, 0.0 }
 0x4d1   :  { %v1324_v32 = vmax.f32 %v1284_v21, 0.0 }
 0x4d2   :  { %v1342_v34 = vpack.c.bf16 %v1326_v25, %v1325_v24 }
 0x4d3   :  { %v1341_v35 = vpack.c.bf16 %v1324_v32, %v1323_v31 }
 0x4d5   :  { %2138 = vmatprep.mubr.bf16.mxu0 %v1341_v35 }
 0x4d6   :  { %2139 = vmatmul.mubr.bf16.gmra.mrb[108].mxu0 %v1342_v34 }
 0x539   :  { %v2112_v37 = vpop.f32.mrb[80].mxu0 }
 0x53a   :  { %v1457_v38 = vadd.f32 %v2112_v37, %v2785_v36  ;;  %v1448_v39 = vpop.f32.mrb[81].mxu0 }
 0x53b   :  { %v1449_v40 = vadd.f32 %v2785_v36, %v1448_v39  ;;  %v2113_v51 = vpop.f32.mrb[82].mxu0 }
 0x53c   :  { %1577 = vst [vmem:[#allocation11 + $0x10] sm:$0xff] %v1457_v38  ;;  %v1460_v41 = vadd.f32 %v2113_v51, %v2785_v36  ;;  %v1451_v42 = vpop.f32.mrb[83].mxu0 }
 0x53d   :  { %1575 = vst [vmem:[#allocation11] sm:$0xff] %v1449_v40  ;;  %v1452_v43 = vadd.f32 %v2785_v36, %v1451_v42 }
 0x53e   :  { %1578 = vst [vmem:[#allocation11 + $0x18] sm:$0xff] %v1460_v41 }
 0x53f   :  { %1576 = vst [vmem:[#allocation11 + $0x8] sm:$0xff] %v1452_v43 }
 0x549   :  { %v2116_v44 = vpop.f32.mrb[84].mxu0 }
 0x54a   :  { %v1473_v45 = vadd.f32 %v2116_v44, %v2785_v36  ;;  %v1464_v46 = vpop.f32.mrb[85].mxu0 }
 0x54b   :  { %v1465_v47 = vadd.f32 %v2785_v36, %v1464_v46  ;;  %v2117_v48 = vpop.f32.mrb[86].mxu0 }
 0x54c   :  { %1581 = vst [vmem:[#allocation11 + $0x30] sm:$0xff] %v1473_v45  ;;  %v1476_v49 = vadd.f32 %v2117_v48, %v2785_v36  ;;  %v1467_v14 = vpop.f32.mrb[87].mxu0 }
 0x54d   :  { %1579 = vst [vmem:[#allocation11 + $0x20] sm:$0xff] %v1465_v47  ;;  %v1468_v16 = vadd.f32 %v2785_v36, %v1467_v14 }
 0x54e   :  { %1582 = vst [vmem:[#allocation11 + $0x38] sm:$0xff] %v1476_v49 }
 0x54f   :  { %1580 = vst [vmem:[#allocation11 + $0x28] sm:$0xff] %v1468_v16 }
 0x559   :  { %v2120_v26 = vpop.f32.mrb[88].mxu0 }
 0x55a   :  { %v1489_v27 = vadd.f32 %v2120_v26, %v2785_v36  ;;  %v1480_v28 = vpop.f32.mrb[89].mxu0 }
 0x55b   :  { %v1481_v50 = vadd.f32 %v2785_v36, %v1480_v28  ;;  %v2121_v52 = vpop.f32.mrb[90].mxu0 }
 0x55c   :  { %1585 = vst [vmem:[#allocation11 + $0x50] sm:$0xff] %v1489_v27  ;;  %v1492_v53 = vadd.f32 %v2121_v52, %v2785_v36  ;;  %v1483_v19 = vpop.f32.mrb[91].mxu0 }
 0x55d   :  { %1583 = vst [vmem:[#allocation11 + $0x40] sm:$0xff] %v1481_v50  ;;  %v1484_v54 = vadd.f32 %v2785_v36, %v1483_v19 }
 0x55e   :  { %1586 = vst [vmem:[#allocation11 + $0x58] sm:$0xff] %v1492_v53 }
 0x55f   :  { %1584 = vst [vmem:[#allocation11 + $0x48] sm:$0xff] %v1484_v54 }
 0x569   :  { %v2124_v56 = vpop.f32.mrb[92].mxu0 }
 0x56a   :  { %v1505_v58 = vadd.f32 %v2124_v56, %v2785_v36  ;;  %v1496_v60 = vpop.f32.mrb[93].mxu0 }
 0x56b   :  { %v1497_v61 = vadd.f32 %v2785_v36, %v1496_v60  ;;  %v2125_v62 = vpop.f32.mrb[94].mxu0 }
 0x56c   :  { %1589 = vst [vmem:[#allocation11 + $0x70] sm:$0xff] %v1505_v58  ;;  %v1508_v63 = vadd.f32 %v2125_v62, %v2785_v36  ;;  %v1499_v0 = vpop.f32.mrb[95].mxu0 }
 0x56d   :  { %1587 = vst [vmem:[#allocation11 + $0x60] sm:$0xff] %v1497_v61  ;;  %v1500_v2 = vadd.f32 %v2785_v36, %v1499_v0 }
 0x56e   :  { %1590 = vst [vmem:[#allocation11 + $0x78] sm:$0xff] %v1508_v63 }
 0x56f   :  { %1588 = vst [vmem:[#allocation11 + $0x68] sm:$0xff] %v1500_v2 }
 0x579   :  { %v2128_v3 = vpop.f32.mrb[96].mxu0 }
 0x57a   :  { %v1521_v4 = vadd.f32 %v2128_v3, %v2785_v36  ;;  %v1512_v5 = vpop.f32.mrb[97].mxu0 }
 0x57b   :  { %v1513_v8 = vadd.f32 %v2785_v36, %v1512_v5  ;;  %v2129_v9 = vpop.f32.mrb[98].mxu0 }
 0x57c   :  { %1593 = vst [vmem:[#allocation11 + $0x90] sm:$0xff] %v1521_v4  ;;  %v1524_v57 = vadd.f32 %v2129_v9, %v2785_v36  ;;  %v1515_v1 = vpop.f32.mrb[99].mxu0 }
 0x57d   :  { %1591 = vst [vmem:[#allocation11 + $0x80] sm:$0xff] %v1513_v8  ;;  %v1516_v15 = vadd.f32 %v2785_v36, %v1515_v1 }
 0x57e   :  { %1594 = vst [vmem:[#allocation11 + $0x98] sm:$0xff] %v1524_v57 }
 0x57f   :  { %1592 = vst [vmem:[#allocation11 + $0x88] sm:$0xff] %v1516_v15 }
 0x589   :  { %v2132_v10 = vpop.f32.mrb[100].mxu0 }
 0x58a   :  { %v1537_v12 = vadd.f32 %v2132_v10, %v2785_v36  ;;  %v1528_v13 = vpop.f32.mrb[101].mxu0 }
 0x58b   :  { %v1529_v55 = vadd.f32 %v2785_v36, %v1528_v13  ;;  %v2133_v11 = vpop.f32.mrb[102].mxu0 }
 0x58c   :  { %1597 = vst [vmem:[#allocation11 + $0xb0] sm:$0xff] %v1537_v12  ;;  %v1540_v7 = vadd.f32 %v2133_v11, %v2785_v36  ;;  %v1531_v59 = vpop.f32.mrb[103].mxu0 }
 0x58d   :  { %1595 = vst [vmem:[#allocation11 + $0xa0] sm:$0xff] %v1529_v55  ;;  %v1532_v6 = vadd.f32 %v2785_v36, %v1531_v59 }
 0x58e   :  { %1598 = vst [vmem:[#allocation11 + $0xb8] sm:$0xff] %v1540_v7 }
 0x58f   :  { %1596 = vst [vmem:[#allocation11 + $0xa8] sm:$0xff] %v1532_v6 }
 0x599   :  { %v2136_v17 = vpop.f32.mrb[104].mxu0 }
 0x59a   :  { %v1553_v18 = vadd.f32 %v2136_v17, %v2785_v36  ;;  %v1544_v22 = vpop.f32.mrb[105].mxu0 }
 0x59b   :  { %v1545_v20 = vadd.f32 %v2785_v36, %v1544_v22  ;;  %v2137_v23 = vpop.f32.mrb[106].mxu0 }
 0x59c   :  { %1601 = vst [vmem:[#allocation11 + $0xd0] sm:$0xff] %v1553_v18  ;;  %v1556_v29 = vadd.f32 %v2137_v23, %v2785_v36  ;;  %v1547_v30 = vpop.f32.mrb[107].mxu0 }
 0x59d   :  { %1599 = vst [vmem:[#allocation11 + $0xc0] sm:$0xff] %v1545_v20  ;;  %v1548_v33 = vadd.f32 %v2785_v36, %v1547_v30 }
 0x59e   :  { %1602 = vst [vmem:[#allocation11 + $0xd8] sm:$0xff] %v1556_v29 }
 0x59f   :  { %1600 = vst [vmem:[#allocation11 + $0xc8] sm:$0xff] %v1548_v33 }
 0x5a9   :  { %v2140_v21 = vpop.f32.mrb[108].mxu0 }
 0x5aa   :  { %v1569_v24 = vadd.f32 %v2140_v21, %v2785_v36  ;;  %v1560_v25 = vpop.f32.mrb[109].mxu0 }
 0x5ab   :  { %v1561_v31 = vadd.f32 %v2785_v36, %v1560_v25  ;;  %v2141_v32 = vpop.f32.mrb[110].mxu0 }
 0x5ac   :  { %1605 = vst [vmem:[#allocation11 + $0xf0] sm:$0xff] %v1569_v24  ;;  %v1572_v34 = vadd.f32 %v2141_v32, %v2785_v36  ;;  %v1563_v35 = vpop.f32.mrb[111].mxu0 }
 0x5ad   :  { %1603 = vst [vmem:[#allocation11 + $0xe0] sm:$0xff] %v1561_v31  ;;  %v1564_v37 = vadd.f32 %v2785_v36, %v1563_v35 }
 0x5ae   :  { %1606 = vst [vmem:[#allocation11 + $0xf8] sm:$0xff] %v1572_v34 }
 0x5af   :  { %1604 = vst [vmem:[#allocation11 + $0xe8] sm:$0xff] %v1564_v37 }
 0x5b0   :  { %2377 = shalt.err (!%p2374_p2)
}
 0x5b1   :  { %s2378_s16 = scalar_lea.hbm %s2843_s9, 4096 }
 0x5b2   :  { %p2379_p3 = scmp.ne.s32.totalorder %s2843_s9, %s2378_s16  ;;  %p2382_p4 = scmp.lt.u32.totalorder %s2378_s16, %s2843_s9 }
 0x5b4   :  { %p2384_p5 = pnand %p2382_p4, %p2379_p3 }
 0x5b6   :  { %2387 = shalt.err (!%p2384_p5)
}
 0x5b7   :  { %1618 = dma.vmem_to_hbm [thread:$0]  %s1613_s1, 4096, %s2843_s9, [#allocation4], %s2401_s5, %s2401_s5, %s2402_s24  }
 0x5b8   :  { %2394 = dma.done.wait [#allocation4], 4096  }
 0x5b9   :  { %2395 = vsyncadd [#allocation4], 4294963200 }
 0x5ba   :  { %1622 = vsyncpa [#allocation3], 1 }
 0x5bb   :  { %1623 = vsyncpa [#allocation6], 1 }
 0x5bc   :  { %1624 = vsyncpa [#allocation9], 1 }
 0x5bd   :  { %1625 = vsyncpa [#allocation4], 1 }

</bundles_post_ra>
